<compile_context>
chip_gen: v7x
topology: tpu7x:2x2x1
jax: 0.10.0
libtpu: 0.0.40
codegen_flags: <defaults>
</compile_context>

<pallas_src>
import functools

import jax
import jax.numpy as jnp
from jax.experimental import pallas as pl
from jax.experimental.pallas import tpu as pltpu

LN_EPS = 1e-5
LEAKY_SLOPE = 0.01  # nn.LeakyReLU default


def _node2edge_kernel(
    x_ref,        # (Bt, S, L)   f32, L = P*D lane-packed features
    wq_ref,       # (L, L)       mm_dtype, block-diag Wq^T with softmax scale folded in
    wkv_ref,      # (L, 2L)      mm_dtype, [block-diag Wk^T | block-diag Wv^T]
    mhead_ref,    # (L, L)       f32, 1 iff same packed element AND same head
    wo_ref,       # (L, L)       mm_dtype, block-diag Wo^T
    w1_ref,       # (L, 2L)      mm_dtype, block-diag W1^T
    w2_ref,       # (2L, L)      mm_dtype, block-diag W2^T
    gmean_ref,    # (L, L)       f32, 1/D iff same packed element (segmented mean)
    vl_ref,       # (7, L)       f32: [bq*scale, bo, b2, ln1_g, ln1_b, ln2_g, ln2_b]
    v2l_ref,      # (2, 2L)      f32: [b_kv, b1]
    o_ref,        # (Bt, L)
    *, mm_dtype, approx_recip,
):
    Bt, S, L = x_ref.shape
    f32 = jnp.float32

    x = x_ref[...]                                           # (Bt, S, L)

    # ---- hyperedge_attr = mean over the set axis (the single query) ----
    q_in = jnp.mean(x, axis=1)                               # (Bt, L)

    # ---- fused K/V projection on the flattened (Bt*S, L) slab ----
    x2 = x.reshape(Bt * S, L).astype(mm_dtype)
    kv = jnp.dot(x2, wkv_ref[...], preferred_element_type=f32) + v2l_ref[0:1, :]
    k = kv[:, :L].reshape(Bt, S, L)                          # 128-aligned lane slice
    v = kv[:, L:].reshape(Bt, S, L)

    # ---- Q projection only on the pooled query (scale folded into wq/bq) ----
    q = jnp.dot(q_in.astype(mm_dtype), wq_ref[...],
                preferred_element_type=f32) + vl_ref[0:1, :]  # (Bt, L)

    # ---- per-head logits replicated over each head's lanes (f32 mask matmul) ----
    qk = q[:, None, :] * k                                   # (Bt, S, L)
    scores = jnp.dot(qk.reshape(Bt * S, L), mhead_ref[...],
                     preferred_element_type=f32).reshape(Bt, S, L)

    # ---- softmax over the set axis S (identical across lanes of one head) ----
    # TODO(synk): exp runs on the head_dim-replicated layout; compact per-head
    # layout only pays off if the EUP slot ever becomes the bottleneck.
    smax = jnp.max(scores, axis=1, keepdims=True)            # (Bt, 1, L)
    p = jnp.exp(scores - smax)
    denom = jnp.sum(p, axis=1, keepdims=True)                # (Bt, 1, L)
    p = p * pl.reciprocal(denom, approx=approx_recip)

    attn = jnp.sum(p * v, axis=1)                            # (Bt, L) concat-of-heads

    sa = jnp.dot(attn.astype(mm_dtype), wo_ref[...],
                 preferred_element_type=f32) + vl_ref[1:2, :]

    # ---- residual + LayerNorm1 (segmented per packed element via g_mean) ----
    h = sa + q_in
    mu = jnp.dot(h, gmean_ref[...], preferred_element_type=f32)
    hc = h - mu
    var = jnp.dot(hc * hc, gmean_ref[...], preferred_element_type=f32)
    h = hc * jax.lax.rsqrt(var + LN_EPS) * vl_ref[3:4, :] + vl_ref[4:5, :]

    # ---- feed-forward block (dropout = identity in eval) ----
    f = jnp.dot(h.astype(mm_dtype), w1_ref[...],
                preferred_element_type=f32) + v2l_ref[1:2, :]  # (Bt, 2L)
    f = jnp.where(f > 0, f, LEAKY_SLOPE * f)                   # LeakyReLU
    f = jnp.dot(f.astype(mm_dtype), w2_ref[...],
                preferred_element_type=f32) + vl_ref[2:3, :]   # (Bt, L)

    # ---- residual + LayerNorm2 ----
    y = f + h
    mu2 = jnp.dot(y, gmean_ref[...], preferred_element_type=f32)
    yc = y - mu2
    var2 = jnp.dot(yc * yc, gmean_ref[...], preferred_element_type=f32)
    o_ref[...] = yc * jax.lax.rsqrt(var2 + LN_EPS) * vl_ref[5:6, :] + vl_ref[6:7, :]


def node2edge_aggregator(x, params, n_heads, *, block_b=512,
                         matmul_dtype=jnp.float32):
    """x: (B, S, D) f32 -> (B, 1, D) f32."""
    B, S, D = x.shape
    assert D % n_heads == 0, "embed_dim must be divisible by n_heads"
    head_dim = D // n_heads
    scale = 1.0 / (head_dim ** 0.5)
    f32 = jnp.float32
    mm_dtype = jnp.dtype(matmul_dtype)
    approx_recip = bool(mm_dtype != jnp.dtype(jnp.float32))

    # ---- lane packing: P batch elements per 128-lane row group ----
    P = max(1, 128 // D)
    L = P * D
    Bp = -(-B // P)                                           # packed rows needed

    # ---- batch tile sizing (packed rows) ----
    VMEM_BUDGET = 16 * 1024 * 1024                            # in-flight slabs budget
    per_row_bytes = 8 * S * L * 4                             # x(2 bufs)+kv+softmax temps
    bt = max(1, min(block_b, Bp))
    bt = min(bt, max(8, VMEM_BUDGET // per_row_bytes))
    if Bp >= 16:
        bt = min(bt, -(-Bp // 2))                             # >=2 grid steps (v7x megacore)
    if Bp >= 8:
        bt = max(8, bt - (bt % 8))                            # sublane-dense output blocks
    else:
        bt = Bp
    grid = (pl.cdiv(Bp, bt),)

    # zero-pad the batch: every tile holds defined data (no Inf/NaN filler work)
    Bp_pad = grid[0] * bt
    B_pad = Bp_pad * P
    if B_pad != B:
        x = jnp.concatenate([x, jnp.zeros((B_pad - B, S, D), x.dtype)], axis=0)

    # lane-pack: x[bp*P + p, s, d] -> x_packed[bp, s, p*D + d]
    x_packed = x.reshape(Bp_pad, P, S, D).transpose(0, 2, 1, 3).reshape(Bp_pad, S, L)
    # TODO(synk): if S is ragged / not a multiple of 8, pad+mask S in the wrapper so the
    # in-kernel (Bt,S,L)<->(Bt*S,L) reshapes stay free; S=8 here is already aligned.

    def block_diag(w, reps):
        a, b = w.shape
        eye = jnp.eye(reps, dtype=w.dtype)
        return (eye[:, None, :, None] * w[None, :, None, :]).reshape(reps * a, reps * b)

    # projection weights: block-diagonal over the P packed elements, matmul dtype
    w_q = (block_diag(params["wq"].T, P) * scale).astype(mm_dtype)            # (L, L)
    w_kv = jnp.concatenate([block_diag(params["wk"].T, P),
                            block_diag(params["wv"].T, P)], axis=1).astype(mm_dtype)  # (L, 2L)
    w_o = block_diag(params["wo"].T, P).astype(mm_dtype)                      # (L, L)
    w_1 = block_diag(params["w1"].T, P).astype(mm_dtype)                      # (L, 2L)
    w_2 = block_diag(params["w2"].T, P).astype(mm_dtype)                      # (2L, L)

    # exact masks (kept f32 so reductions keep full precision)
    head_of = jnp.arange(D) // head_dim
    m_head = block_diag((head_of[:, None] == head_of[None, :]).astype(f32), P)  # (L, L)
    g_mean = block_diag(jnp.full((D, D), 1.0 / D, f32), P)                      # (L, L)

    vecs_L = jnp.stack([
        jnp.tile(params["bq"], P) * scale,
        jnp.tile(params["bo"], P),
        jnp.tile(params["b2"], P),
        jnp.tile(params["ln1_g"], P),
        jnp.tile(params["ln1_b"], P),
        jnp.tile(params["ln2_g"], P),
        jnp.tile(params["ln2_b"], P),
    ], axis=0).astype(f32)                                                      # (7, L)
    vecs_2L = jnp.stack([
        jnp.concatenate([jnp.tile(params["bk"], P), jnp.tile(params["bv"], P)]),
        jnp.tile(params["b1"], P),
    ], axis=0).astype(f32)                                                      # (2, 2L)

    def resident(shape):
        return pl.BlockSpec(shape, lambda i: (0, 0))

    in_specs = [
        pl.BlockSpec((bt, S, L), lambda i: (i, 0, 0)),   # x (batch-tiled)
        resident((L, L)),                                # w_q
        resident((L, 2 * L)),                            # w_kv
        resident((L, L)),                                # m_head
        resident((L, L)),                                # w_o
        resident((L, 2 * L)),                            # w_1
        resident((2 * L, L)),                            # w_2
        resident((L, L)),                                # g_mean
        resident((7, L)),                                # vecs_L
        resident((2, 2 * L)),                            # vecs_2L
    ]
    out_spec = pl.BlockSpec((bt, L), lambda i: (i, 0))   # lane-dense (L >= 128 here)

    kernel = functools.partial(_node2edge_kernel,
                               mm_dtype=mm_dtype, approx_recip=approx_recip)

    out = pl.pallas_call(
        kernel,
        out_shape=jax.ShapeDtypeStruct((Bp_pad, L), f32),
        grid_spec=pltpu.PrefetchScalarGridSpec(
            num_scalar_prefetch=0,
            grid=grid,
            in_specs=in_specs,
            out_specs=out_spec,
        ),
        compiler_params=pltpu.CompilerParams(
            dimension_semantics=("parallel",),
            vmem_limit_bytes=32 * 1024 * 1024,
        ),
    )(x_packed, w_q, w_kv, m_head, w_o, w_1, w_2, g_mean, vecs_L, vecs_2L)

    # unpack lanes back to (B, 1, D)
    return out.reshape(Bp_pad * P, D)[:B].reshape(B, 1, D)


# ---------------- pure-JAX reference (for verification) ----------------
def _reference(x, params, n_heads):
    B, S, D = x.shape
    hd = D // n_heads
    q_in = jnp.mean(x, axis=1, keepdims=True)                       # (B,1,D)
    q = q_in @ params["wq"].T + params["bq"]
    k = x @ params["wk"].T + params["bk"]
    v = x @ params["wv"].T + params["bv"]
    qh = q.reshape(B, 1, n_heads, hd).transpose(0, 2, 1, 3)          # (B,H,1,hd)
    kh = k.reshape(B, S, n_heads, hd).transpose(0, 2, 1, 3)
    vh = v.reshape(B, S, n_heads, hd).transpose(0, 2, 1, 3)
    scores = jnp.einsum("bhqd,bhkd->bhqk", qh, kh) / (hd ** 0.5)
    p = jax.nn.softmax(scores, axis=-1)
    o = jnp.einsum("bhqk,bhkd->bhqd", p, vh).transpose(0, 2, 1, 3).reshape(B, 1, D)
    sa = o @ params["wo"].T + params["bo"]

    def ln(y, g, b):
        mu = jnp.mean(y, axis=-1, keepdims=True)
        var = jnp.mean((y - mu) ** 2, axis=-1, keepdims=True)
        return (y - mu) / jnp.sqrt(var + LN_EPS) * g + b

    h = ln(sa + q_in, params["ln1_g"], params["ln1_b"])
    f = h @ params["w1"].T + params["b1"]
    f = jnp.where(f > 0, f, LEAKY_SLOPE * f)
    f = f @ params["w2"].T + params["b2"]
    return ln(f + h, params["ln2_g"], params["ln2_b"])


def init_params(key, embed_dim):
    D = embed_dim
    ks = jax.random.split(key, 8)
    s = 1.0 / (D ** 0.5)
    params = {
        "wq": jax.random.uniform(ks[0], (D, D), jnp.float32, -s, s),
        "wk": jax.random.uniform(ks[1], (D, D), jnp.float32, -s, s),
        "wv": jax.random.uniform(ks[2], (D, D), jnp.float32, -s, s),
        "bq": jnp.zeros((D,), jnp.float32),
        "bk": jnp.zeros((D,), jnp.float32),
        "bv": jnp.zeros((D,), jnp.float32),
        "wo": jax.random.uniform(ks[3], (D, D), jnp.float32, -s, s),
        "bo": jax.random.uniform(ks[4], (D,), jnp.float32, -s, s),
        "w1": jax.random.uniform(ks[5], (2 * D, D), jnp.float32, -s, s),
        "b1": jax.random.uniform(ks[6], (2 * D,), jnp.float32, -s, s),
        "w2": jax.random.uniform(ks[7], (D, 2 * D), jnp.float32,
                                 -1.0 / (2 * D) ** 0.5, 1.0 / (2 * D) ** 0.5),
        "b2": jnp.zeros((D,), jnp.float32),
        "ln1_g": jnp.ones((D,), jnp.float32),
        "ln1_b": jnp.zeros((D,), jnp.float32),
        "ln2_g": jnp.ones((D,), jnp.float32),
        "ln2_b": jnp.zeros((D,), jnp.float32),
    }
    return params


if __name__ == "__main__":
    bsz, max_size, embed_dim, n_heads = 16, 8, 32, 4

    key = jax.random.PRNGKey(0)
    kx, kp = jax.random.split(key)
    x = jax.random.normal(kx, (bsz, max_size, embed_dim), jnp.float32)
    params = init_params(kp, embed_dim)

    ref = _reference(x, params, n_heads)

    # exact path: f32 matmul operands, tight self-check
    out = node2edge_aggregator(x, params, n_heads)
    out = jax.block_until_ready(out)
    assert out.shape == (bsz, 1, embed_dim)
    assert jnp.allclose(out, ref, atol=1e-4, rtol=1e-4), "f32 kernel mismatch vs reference"

    # fast path: bf16 matmul operands (softmax / LayerNorm / residual stay f32)
    out_bf16 = node2edge_aggregator(x, params, n_heads, matmul_dtype=jnp.bfloat16)
    out_bf16 = jax.block_until_ready(out_bf16)
    assert jnp.allclose(out_bf16, ref, atol=1e-1, rtol=1e-1), "bf16 kernel mismatch vs reference"

    print("KERNEL_OK")
</pallas_src>

<mosaic_0001>
module attributes {stable_mosaic.version = 11 : i64} {
  func.func @_node2edge_kernel(%arg0: i32, %arg1: memref<4x8x128xf32, #tpu.memory_space<vmem>>, %arg2: memref<128x128xf32, #tpu.memory_space<vmem>>, %arg3: memref<128x256xf32, #tpu.memory_space<vmem>>, %arg4: memref<128x128xf32, #tpu.memory_space<vmem>>, %arg5: memref<128x128xf32, #tpu.memory_space<vmem>>, %arg6: memref<128x256xf32, #tpu.memory_space<vmem>>, %arg7: memref<256x128xf32, #tpu.memory_space<vmem>>, %arg8: memref<128x128xf32, #tpu.memory_space<vmem>>, %arg9: memref<7x128xf32, #tpu.memory_space<vmem>>, %arg10: memref<2x256xf32, #tpu.memory_space<vmem>>, %arg11: memref<4x128xf32, #tpu.memory_space<vmem>>) attributes {dimension_semantics = [#tpu.dimension_semantics<parallel>], iteration_bounds = array<i64: 1>, scalar_prefetch = 0 : i64, scratch_operands = 0 : i64, tpu.core_type = #tpu.core_type<tc>, window_params = [{transform_indices = @transform_0, window_bounds = array<i64: 4, 8, 128>}, {pipeline_mode = #tpu.pipeline_mode<synchronous>, transform_indices = @transform_1, window_bounds = array<i64: 128, 128>}, {pipeline_mode = #tpu.pipeline_mode<synchronous>, transform_indices = @transform_2, window_bounds = array<i64: 128, 256>}, {pipeline_mode = #tpu.pipeline_mode<synchronous>, transform_indices = @transform_3, window_bounds = array<i64: 128, 128>}, {pipeline_mode = #tpu.pipeline_mode<synchronous>, transform_indices = @transform_4, window_bounds = array<i64: 128, 128>}, {pipeline_mode = #tpu.pipeline_mode<synchronous>, transform_indices = @transform_5, window_bounds = array<i64: 128, 256>}, {pipeline_mode = #tpu.pipeline_mode<synchronous>, transform_indices = @transform_6, window_bounds = array<i64: 256, 128>}, {pipeline_mode = #tpu.pipeline_mode<synchronous>, transform_indices = @transform_7, window_bounds = array<i64: 128, 128>}, {pipeline_mode = #tpu.pipeline_mode<synchronous>, transform_indices = @transform_8, window_bounds = array<i64: 7, 128>}, {pipeline_mode = #tpu.pipeline_mode<synchronous>, transform_indices = @transform_9, window_bounds = array<i64: 2, 256>}, {transform_indices = @transform_10, window_bounds = array<i64: 4, 128>}]} {
    %c0 = arith.constant 0 : index
    %c0_0 = arith.constant 0 : index
    %c0_1 = arith.constant 0 : index
    %0 = vector.load %arg1[%c0, %c0_0, %c0_1] : memref<4x8x128xf32, #tpu.memory_space<vmem>>, vector<4x8x128xf32>
    %cst = arith.constant dense<0.000000e+00> : vector<4x128xf32>
    %1 = vector.multi_reduction <add>, %0, %cst [1] : vector<4x8x128xf32> to vector<4x128xf32>
    %cst_2 = arith.constant 8.000000e+00 : f32
    %2 = vector.broadcast %cst_2 : f32 to vector<4x128xf32>
    %3 = arith.divf %1, %2 : vector<4x128xf32>
    %4 = vector.shape_cast %0 : vector<4x8x128xf32> to vector<32x128xf32>
    %c0_3 = arith.constant 0 : index
    %c0_4 = arith.constant 0 : index
    %5 = vector.load %arg3[%c0_3, %c0_4] : memref<128x256xf32, #tpu.memory_space<vmem>>, vector<128x256xf32>
    %cst_5 = arith.constant dense<0.000000e+00> : vector<32x256xf32>
    %6 = tpu.matmul %4, %5, %cst_5 {dimension_numbers = #tpu.dot_dimension_numbers<[1], [0], [0], [1], [0, 0, 1, 1], [], []>} : vector<32x128xf32>, vector<128x256xf32>, vector<32x256xf32> -> vector<32x256xf32>
    %c0_6 = arith.constant 0 : index
    %c0_7 = arith.constant 0 : index
    %7 = vector.load %arg10[%c0_6, %c0_7] : memref<2x256xf32, #tpu.memory_space<vmem>>, vector<1x256xf32>
    %8 = vector.broadcast %7 : vector<1x256xf32> to vector<32x256xf32>
    %9 = arith.addf %6, %8 : vector<32x256xf32>
    %10 = vector.extract_strided_slice %9 {offsets = [0, 0], sizes = [32, 128], strides = [1, 1]} : vector<32x256xf32> to vector<32x128xf32>
    %11 = vector.shape_cast %10 : vector<32x128xf32> to vector<4x8x128xf32>
    %12 = vector.extract_strided_slice %9 {offsets = [0, 128], sizes = [32, 128], strides = [1, 1]} : vector<32x256xf32> to vector<32x128xf32>
    %13 = vector.shape_cast %12 : vector<32x128xf32> to vector<4x8x128xf32>
    %c0_8 = arith.constant 0 : index
    %c0_9 = arith.constant 0 : index
    %14 = vector.load %arg2[%c0_8, %c0_9] : memref<128x128xf32, #tpu.memory_space<vmem>>, vector<128x128xf32>
    %cst_10 = arith.constant dense<0.000000e+00> : vector<4x128xf32>
    %15 = tpu.matmul %3, %14, %cst_10 {dimension_numbers = #tpu.dot_dimension_numbers<[1], [0], [0], [1], [0, 0, 1, 1], [], []>} : vector<4x128xf32>, vector<128x128xf32>, vector<4x128xf32> -> vector<4x128xf32>
    %c0_11 = arith.constant 0 : index
    %c0_12 = arith.constant 0 : index
    %16 = vector.load %arg9[%c0_11, %c0_12] : memref<7x128xf32, #tpu.memory_space<vmem>>, vector<1x128xf32>
    %17 = vector.broadcast %16 : vector<1x128xf32> to vector<4x128xf32>
    %18 = arith.addf %15, %17 : vector<4x128xf32>
    %19 = vector.shape_cast %18 : vector<4x128xf32> to vector<4x1x128xf32>
    %20 = vector.broadcast %19 : vector<4x1x128xf32> to vector<4x8x128xf32>
    %21 = arith.mulf %20, %11 : vector<4x8x128xf32>
    %22 = vector.shape_cast %21 : vector<4x8x128xf32> to vector<32x128xf32>
    %c0_13 = arith.constant 0 : index
    %c0_14 = arith.constant 0 : index
    %23 = vector.load %arg4[%c0_13, %c0_14] : memref<128x128xf32, #tpu.memory_space<vmem>>, vector<128x128xf32>
    %cst_15 = arith.constant dense<0.000000e+00> : vector<32x128xf32>
    %24 = tpu.matmul %22, %23, %cst_15 {dimension_numbers = #tpu.dot_dimension_numbers<[1], [0], [0], [1], [0, 0, 1, 1], [], []>} : vector<32x128xf32>, vector<128x128xf32>, vector<32x128xf32> -> vector<32x128xf32>
    %25 = vector.shape_cast %24 : vector<32x128xf32> to vector<4x8x128xf32>
    %cst_16 = arith.constant dense<0xFF800000> : vector<4x128xf32>
    %26 = vector.multi_reduction <maximumf>, %25, %cst_16 [1] : vector<4x8x128xf32> to vector<4x128xf32>
    %27 = vector.shape_cast %26 : vector<4x128xf32> to vector<4x1x128xf32>
    %28 = vector.broadcast %27 : vector<4x1x128xf32> to vector<4x8x128xf32>
    %29 = arith.subf %25, %28 : vector<4x8x128xf32>
    %30 = math.exp %29 : vector<4x8x128xf32>
    %cst_17 = arith.constant dense<0.000000e+00> : vector<4x128xf32>
    %31 = vector.multi_reduction <add>, %30, %cst_17 [1] : vector<4x8x128xf32> to vector<4x128xf32>
    %32 = vector.shape_cast %31 : vector<4x128xf32> to vector<4x1x128xf32>
    %33 = tpu.reciprocal %32 : vector<4x1x128xf32> -> vector<4x1x128xf32>
    %34 = vector.broadcast %33 : vector<4x1x128xf32> to vector<4x8x128xf32>
    %35 = arith.mulf %30, %34 : vector<4x8x128xf32>
    %36 = arith.mulf %35, %13 : vector<4x8x128xf32>
    %cst_18 = arith.constant dense<0.000000e+00> : vector<4x128xf32>
    %37 = vector.multi_reduction <add>, %36, %cst_18 [1] : vector<4x8x128xf32> to vector<4x128xf32>
    %c0_19 = arith.constant 0 : index
    %c0_20 = arith.constant 0 : index
    %38 = vector.load %arg5[%c0_19, %c0_20] : memref<128x128xf32, #tpu.memory_space<vmem>>, vector<128x128xf32>
    %cst_21 = arith.constant dense<0.000000e+00> : vector<4x128xf32>
    %39 = tpu.matmul %37, %38, %cst_21 {dimension_numbers = #tpu.dot_dimension_numbers<[1], [0], [0], [1], [0, 0, 1, 1], [], []>} : vector<4x128xf32>, vector<128x128xf32>, vector<4x128xf32> -> vector<4x128xf32>
    %c1 = arith.constant 1 : index
    %c0_22 = arith.constant 0 : index
    %40 = vector.load %arg9[%c1, %c0_22] : memref<7x128xf32, #tpu.memory_space<vmem>>, vector<1x128xf32>
    %41 = vector.broadcast %40 : vector<1x128xf32> to vector<4x128xf32>
    %42 = arith.addf %39, %41 : vector<4x128xf32>
    %43 = arith.addf %42, %3 : vector<4x128xf32>
    %c0_23 = arith.constant 0 : index
    %c0_24 = arith.constant 0 : index
    %44 = vector.load %arg8[%c0_23, %c0_24] : memref<128x128xf32, #tpu.memory_space<vmem>>, vector<128x128xf32>
    %cst_25 = arith.constant dense<0.000000e+00> : vector<4x128xf32>
    %45 = tpu.matmul %43, %44, %cst_25 {dimension_numbers = #tpu.dot_dimension_numbers<[1], [0], [0], [1], [0, 0, 1, 1], [], []>} : vector<4x128xf32>, vector<128x128xf32>, vector<4x128xf32> -> vector<4x128xf32>
    %46 = arith.subf %43, %45 : vector<4x128xf32>
    %47 = arith.mulf %46, %46 : vector<4x128xf32>
    %c0_26 = arith.constant 0 : index
    %c0_27 = arith.constant 0 : index
    %48 = vector.load %arg8[%c0_26, %c0_27] : memref<128x128xf32, #tpu.memory_space<vmem>>, vector<128x128xf32>
    %cst_28 = arith.constant dense<0.000000e+00> : vector<4x128xf32>
    %49 = tpu.matmul %47, %48, %cst_28 {dimension_numbers = #tpu.dot_dimension_numbers<[1], [0], [0], [1], [0, 0, 1, 1], [], []>} : vector<4x128xf32>, vector<128x128xf32>, vector<4x128xf32> -> vector<4x128xf32>
    %cst_29 = arith.constant 9.99999974E-6 : f32
    %50 = vector.broadcast %cst_29 : f32 to vector<4x128xf32>
    %51 = arith.addf %49, %50 : vector<4x128xf32>
    %52 = math.rsqrt %51 : vector<4x128xf32>
    %53 = arith.mulf %46, %52 : vector<4x128xf32>
    %c3 = arith.constant 3 : index
    %c0_30 = arith.constant 0 : index
    %54 = vector.load %arg9[%c3, %c0_30] : memref<7x128xf32, #tpu.memory_space<vmem>>, vector<1x128xf32>
    %55 = vector.broadcast %54 : vector<1x128xf32> to vector<4x128xf32>
    %56 = arith.mulf %53, %55 : vector<4x128xf32>
    %c4 = arith.constant 4 : index
    %c0_31 = arith.constant 0 : index
    %57 = vector.load %arg9[%c4, %c0_31] : memref<7x128xf32, #tpu.memory_space<vmem>>, vector<1x128xf32>
    %58 = vector.broadcast %57 : vector<1x128xf32> to vector<4x128xf32>
    %59 = arith.addf %56, %58 : vector<4x128xf32>
    %c0_32 = arith.constant 0 : index
    %c0_33 = arith.constant 0 : index
    %60 = vector.load %arg6[%c0_32, %c0_33] : memref<128x256xf32, #tpu.memory_space<vmem>>, vector<128x256xf32>
    %cst_34 = arith.constant dense<0.000000e+00> : vector<4x256xf32>
    %61 = tpu.matmul %59, %60, %cst_34 {dimension_numbers = #tpu.dot_dimension_numbers<[1], [0], [0], [1], [0, 0, 1, 1], [], []>} : vector<4x128xf32>, vector<128x256xf32>, vector<4x256xf32> -> vector<4x256xf32>
    %c1_35 = arith.constant 1 : index
    %c0_36 = arith.constant 0 : index
    %62 = vector.load %arg10[%c1_35, %c0_36] : memref<2x256xf32, #tpu.memory_space<vmem>>, vector<1x256xf32>
    %63 = vector.broadcast %62 : vector<1x256xf32> to vector<4x256xf32>
    %64 = arith.addf %61, %63 : vector<4x256xf32>
    %cst_37 = arith.constant 0.000000e+00 : f32
    %65 = vector.broadcast %cst_37 : f32 to vector<4x256xf32>
    %66 = arith.cmpf ogt, %64, %65 : vector<4x256xf32>
    %cst_38 = arith.constant 0.00999999977 : f32
    %67 = vector.broadcast %cst_38 : f32 to vector<4x256xf32>
    %68 = arith.mulf %67, %64 : vector<4x256xf32>
    %69 = arith.select %66, %64, %68 : vector<4x256xi1>, vector<4x256xf32>
    %c0_39 = arith.constant 0 : index
    %c0_40 = arith.constant 0 : index
    %70 = vector.load %arg7[%c0_39, %c0_40] : memref<256x128xf32, #tpu.memory_space<vmem>>, vector<256x128xf32>
    %cst_41 = arith.constant dense<0.000000e+00> : vector<4x128xf32>
    %71 = tpu.matmul %69, %70, %cst_41 {dimension_numbers = #tpu.dot_dimension_numbers<[1], [0], [0], [1], [0, 0, 1, 1], [], []>} : vector<4x256xf32>, vector<256x128xf32>, vector<4x128xf32> -> vector<4x128xf32>
    %c2 = arith.constant 2 : index
    %c0_42 = arith.constant 0 : index
    %72 = vector.load %arg9[%c2, %c0_42] : memref<7x128xf32, #tpu.memory_space<vmem>>, vector<1x128xf32>
    %73 = vector.broadcast %72 : vector<1x128xf32> to vector<4x128xf32>
    %74 = arith.addf %71, %73 : vector<4x128xf32>
    %75 = arith.addf %74, %59 : vector<4x128xf32>
    %c0_43 = arith.constant 0 : index
    %c0_44 = arith.constant 0 : index
    %76 = vector.load %arg8[%c0_43, %c0_44] : memref<128x128xf32, #tpu.memory_space<vmem>>, vector<128x128xf32>
    %cst_45 = arith.constant dense<0.000000e+00> : vector<4x128xf32>
    %77 = tpu.matmul %75, %76, %cst_45 {dimension_numbers = #tpu.dot_dimension_numbers<[1], [0], [0], [1], [0, 0, 1, 1], [], []>} : vector<4x128xf32>, vector<128x128xf32>, vector<4x128xf32> -> vector<4x128xf32>
    %78 = arith.subf %75, %77 : vector<4x128xf32>
    %79 = arith.mulf %78, %78 : vector<4x128xf32>
    %c0_46 = arith.constant 0 : index
    %c0_47 = arith.constant 0 : index
    %80 = vector.load %arg8[%c0_46, %c0_47] : memref<128x128xf32, #tpu.memory_space<vmem>>, vector<128x128xf32>
    %cst_48 = arith.constant dense<0.000000e+00> : vector<4x128xf32>
    %81 = tpu.matmul %79, %80, %cst_48 {dimension_numbers = #tpu.dot_dimension_numbers<[1], [0], [0], [1], [0, 0, 1, 1], [], []>} : vector<4x128xf32>, vector<128x128xf32>, vector<4x128xf32> -> vector<4x128xf32>
    %cst_49 = arith.constant 9.99999974E-6 : f32
    %82 = vector.broadcast %cst_49 : f32 to vector<4x128xf32>
    %83 = arith.addf %81, %82 : vector<4x128xf32>
    %84 = math.rsqrt %83 : vector<4x128xf32>
    %85 = arith.mulf %78, %84 : vector<4x128xf32>
    %c5 = arith.constant 5 : index
    %c0_50 = arith.constant 0 : index
    %86 = vector.load %arg9[%c5, %c0_50] : memref<7x128xf32, #tpu.memory_space<vmem>>, vector<1x128xf32>
    %87 = vector.broadcast %86 : vector<1x128xf32> to vector<4x128xf32>
    %88 = arith.mulf %85, %87 : vector<4x128xf32>
    %c6 = arith.constant 6 : index
    %c0_51 = arith.constant 0 : index
    %89 = vector.load %arg9[%c6, %c0_51] : memref<7x128xf32, #tpu.memory_space<vmem>>, vector<1x128xf32>
    %90 = vector.broadcast %89 : vector<1x128xf32> to vector<4x128xf32>
    %91 = arith.addf %88, %90 : vector<4x128xf32>
    %c0_52 = arith.constant 0 : index
    %c0_53 = arith.constant 0 : index
    %92 = vector.load %arg11[%c0_52, %c0_53] : memref<4x128xf32, #tpu.memory_space<vmem>>, vector<4x128xf32>
    tpu.vector_store %arg11[%c0_52, %c0_53], %91 {strides = array<i32>} : memref<4x128xf32, #tpu.memory_space<vmem>>, vector<4x128xf32>,
    return
  }
  func.func @transform_0(%arg0: i32) -> (i32, i32, i32) {
    %c0_i32 = arith.constant 0 : i32
    %c0_i32_0 = arith.constant 0 : i32
    %c0_i32_1 = arith.constant 0 : i32
    return %arg0, %c0_i32, %c0_i32_0 : i32, i32, i32
  }
  func.func @transform_1(%arg0: i32) -> (i32, i32) {
    %c0_i32 = arith.constant 0 : i32
    %c0_i32_0 = arith.constant 0 : i32
    %c0_i32_1 = arith.constant 0 : i32
    return %c0_i32, %c0_i32_0 : i32, i32
  }
  func.func @transform_2(%arg0: i32) -> (i32, i32) {
    %c0_i32 = arith.constant 0 : i32
    %c0_i32_0 = arith.constant 0 : i32
    %c0_i32_1 = arith.constant 0 : i32
    return %c0_i32, %c0_i32_0 : i32, i32
  }
  func.func @transform_3(%arg0: i32) -> (i32, i32) {
    %c0_i32 = arith.constant 0 : i32
    %c0_i32_0 = arith.constant 0 : i32
    %c0_i32_1 = arith.constant 0 : i32
    return %c0_i32, %c0_i32_0 : i32, i32
  }
  func.func @transform_4(%arg0: i32) -> (i32, i32) {
    %c0_i32 = arith.constant 0 : i32
    %c0_i32_0 = arith.constant 0 : i32
    %c0_i32_1 = arith.constant 0 : i32
    return %c0_i32, %c0_i32_0 : i32, i32
  }
  func.func @transform_5(%arg0: i32) -> (i32, i32) {
    %c0_i32 = arith.constant 0 : i32
    %c0_i32_0 = arith.constant 0 : i32
    %c0_i32_1 = arith.constant 0 : i32
    return %c0_i32, %c0_i32_0 : i32, i32
  }
  func.func @transform_6(%arg0: i32) -> (i32, i32) {
    %c0_i32 = arith.constant 0 : i32
    %c0_i32_0 = arith.constant 0 : i32
    %c0_i32_1 = arith.constant 0 : i32
    return %c0_i32, %c0_i32_0 : i32, i32
  }
  func.func @transform_7(%arg0: i32) -> (i32, i32) {
    %c0_i32 = arith.constant 0 : i32
    %c0_i32_0 = arith.constant 0 : i32
    %c0_i32_1 = arith.constant 0 : i32
    return %c0_i32, %c0_i32_0 : i32, i32
  }
  func.func @transform_8(%arg0: i32) -> (i32, i32) {
    %c0_i32 = arith.constant 0 : i32
    %c0_i32_0 = arith.constant 0 : i32
    %c0_i32_1 = arith.constant 0 : i32
    return %c0_i32, %c0_i32_0 : i32, i32
  }
  func.func @transform_9(%arg0: i32) -> (i32, i32) {
    %c0_i32 = arith.constant 0 : i32
    %c0_i32_0 = arith.constant 0 : i32
    %c0_i32_1 = arith.constant 0 : i32
    return %c0_i32, %c0_i32_0 : i32, i32
  }
  func.func @transform_10(%arg0: i32) -> (i32, i32) {
    %c0_i32 = arith.constant 0 : i32
    %c0_i32_0 = arith.constant 0 : i32
    return %arg0, %c0_i32 : i32, i32
  }
}

</mosaic_0001>

<bundles_post_ra>
// kernel: tpu_custom_call.1
= control target key start
LH: loop header
LB: loop body
LE: loop exit
PB: predicated region body
PF: predicated region fallthrough
CT: control target
= control target key end

     0   :  { %15 = vsyncpa [#allocation3], 0  ;;  %s2709_s0 = inlined_call_operand.hbm [shape: f32[4,8,128], index: 0, kind: input, shape index: {}]   ;;  %s2710_s1 = inlined_call_operand.hbm [shape: f32[128,128], index: 1, kind: input, shape index: {}]   ;;  %s2711_s2 = inlined_call_operand.hbm [shape: f32[128,256], index: 2, kind: input, shape index: {}]   ;;  %s2712_s3 = inlined_call_operand.hbm [shape: f32[128,128], index: 3, kind: input, shape index: {}]   ;;  %s2713_s4 = inlined_call_operand.hbm [shape: f32[128,128], index: 4, kind: input, shape index: {}]   ;;  %s2714_s5 = inlined_call_operand.hbm [shape: f32[128,256], index: 5, kind: input, shape index: {}]   ;;  %s2715_s6 = inlined_call_operand.hbm [shape: f32[256,128], index: 6, kind: input, shape index: {}]   ;;  %s2716_s7 = inlined_call_operand.hbm [shape: f32[128,128], index: 7, kind: input, shape index: {}]   ;;  %s2717_s8 = inlined_call_operand.vmem [shape: f32[7,128], index: 8, kind: input, shape index: {}]   ;;  %s2718_s9 = inlined_call_operand.vmem [shape: f32[2,256], index: 9, kind: input, shape index: {}]   ;;  %s2719_s10 = inlined_call_operand.hbm [shape: f32[4,128], index: 10, kind: output, shape index: {}]  }
   0x1   :  { %16 = vsyncpa [#allocation6], 0 }
   0x2   :  { %17 = vsyncpa [#allocation9], 0 }
   0x3   :  { %18 = vsyncpa [#allocation12], 0 }
   0x4   :  { %19 = vsyncpa [#allocation15], 0 }
   0x5   :  { %20 = vsyncpa [#allocation4], 0  ;;  %s2269_s13 = smov [#allocation5]   ;;  %s2270_s15 = smov [#allocation8]  }
   0x6   :  { %s38_s14 = sshll.u32 %s2269_s13, 4  ;;  %s62_s16 = sshll.u32 %s2270_s15, 4  ;;  %s39_s14 = int_to_ptr.vmem [resolvable:$true] %s38_s14  ;;  %s2341_s16 = int_to_ptr.vmem [resolvable:$true] %s62_s16 }
   0x7   :  { %s2059_s19 = scalar_lea.hbm %s2710_s1, 2048 }
   0x8   :  { %p2060_p0 = scmp.ne.s32.totalorder %s2710_s1, %s2059_s19  ;;  %p2063_p1 = scmp.lt.u32.totalorder %s2059_s19, %s2710_s1 }
   0xa   :  { %p2065_p2 = pnand %p2063_p1, %p2060_p0 }
   0xc   :  { %2068 = shalt.err (!%p2065_p2)
}
   0xd   :  { %s2069_s24 = scalar_lea.vmem %s39_s14, 2048  ;;  %p2074_p4 = scmp.lt.s32.totalorder %s39_s14, %s39_s14 }
   0xe   :  { %p2070_p3 = scmp.ne.s32.totalorder %s39_s14, %s2069_s24  ;;  %p2075_p5 = scmp.lt.s32.totalorder %s2069_s24, %s2069_s24 }
  0x10   :  { %p2076_p6 = por %p2075_p5, %p2074_p4 }
  0x12   :  { %p2077_p7 = pnand %p2076_p6, %p2070_p3 }
  0x14   :  { %2080 = shalt.err (!%p2077_p7)
}
  0x15   :  { %s2271_s25 = smov 128   ;;  %s2272_s26 = smov 8  }
  0x16   :  { %44 = dma.hbm_to_vmem [thread:$0]  %s2710_s1, 2048, %s39_s14, [#allocation6], %s2271_s25, %s2271_s25, %s2272_s26  }
  0x17   :  { %s2081_s11 = scalar_lea.hbm %s2712_s3, 2048 }
  0x18   :  { %p2082_p8 = scmp.ne.s32.totalorder %s2712_s3, %s2081_s11  ;;  %p2085_p9 = scmp.lt.u32.totalorder %s2081_s11, %s2712_s3 }
  0x1a   :  { %p2087_p10 = pnand %p2085_p9, %p2082_p8 }
  0x1c   :  { %2090 = shalt.err (!%p2087_p10)
}
  0x1d   :  { %s2091_s18 = scalar_lea.vmem %s2341_s16, 2048  ;;  %p2096_p12 = scmp.lt.s32.totalorder %s2341_s16, %s2341_s16 }
  0x1e   :  { %p2092_p11 = scmp.ne.s32.totalorder %s2341_s16, %s2091_s18  ;;  %p2097_p13 = scmp.lt.s32.totalorder %s2091_s18, %s2091_s18 }
  0x20   :  { %p2098_p0 = por %p2097_p13, %p2096_p12 }
  0x22   :  { %p2099_p1 = pnand %p2098_p0, %p2092_p11 }
  0x24   :  { %2102 = shalt.err (!%p2099_p1)
}
  0x25   :  { %68 = dma.hbm_to_vmem [thread:$0]  %s2712_s3, 2048, %s2341_s16, [#allocation9], %s2271_s25, %s2271_s25, %s2272_s26  }
  0x26   :  { %s2273_s19 = smov [#allocation11]   ;;  %s2274_s21 = smov [#allocation2]  }
  0x27   :  { %s86_s20 = sshll.u32 %s2273_s19, 4  ;;  %s26_s22 = sshll.u32 %s2274_s21, 4  ;;  %s87_s20 = int_to_ptr.vmem [resolvable:$true] %s86_s20  ;;  %s2378_s22 = int_to_ptr.vmem [resolvable:$true] %s26_s22 }
  0x28   :  { %s2103_s27 = scalar_lea.hbm %s2714_s5, 4096 }
  0x29   :  { %p2104_p2 = scmp.ne.s32.totalorder %s2714_s5, %s2103_s27  ;;  %p2107_p3 = scmp.lt.u32.totalorder %s2103_s27, %s2714_s5 }
  0x2b   :  { %p2109_p4 = pnand %p2107_p3, %p2104_p2 }
  0x2d   :  { %2112 = shalt.err (!%p2109_p4)
}
  0x2e   :  { %s2113_s3 = scalar_lea.vmem %s87_s20, 4096  ;;  %p2118_p6 = scmp.lt.s32.totalorder %s87_s20, %s87_s20 }
  0x2f   :  { %p2114_p5 = scmp.ne.s32.totalorder %s87_s20, %s2113_s3  ;;  %p2119_p7 = scmp.lt.s32.totalorder %s2113_s3, %s2113_s3 }
  0x31   :  { %p2120_p8 = por %p2119_p7, %p2118_p6 }
  0x33   :  { %p2121_p9 = pnand %p2120_p8, %p2114_p5 }
  0x35   :  { %2124 = shalt.err (!%p2121_p9)
}
  0x36   :  { %s2275_s16 = smov 256   ;;  %s2276_s12 = smov 16  }
  0x37   :  { %92 = dma.hbm_to_vmem [thread:$0]  %s2714_s5, 4096, %s87_s20, [#allocation12], %s2275_s16, %s2275_s16, %s2276_s12  }
  0x38   :  { %s2125_s1 = scalar_lea.hbm %s2709_s0, 512 }
  0x39   :  { %p2126_p10 = scmp.ne.s32.totalorder %s2709_s0, %s2125_s1  ;;  %p2129_p11 = scmp.lt.u32.totalorder %s2125_s1, %s2709_s0 }
  0x3b   :  { %p2131_p12 = pnand %p2129_p11, %p2126_p10 }
  0x3d   :  { %2134 = shalt.err (!%p2131_p12)
}
  0x3e   :  { %s2135_s24 = scalar_lea.vmem %s2378_s22, 512  ;;  %p2140_p0 = scmp.lt.s32.totalorder %s2378_s22, %s2378_s22 }
  0x3f   :  { %p2136_p13 = scmp.ne.s32.totalorder %s2378_s22, %s2135_s24  ;;  %p2141_p1 = scmp.lt.s32.totalorder %s2135_s24, %s2135_s24 }
  0x41   :  { %p2142_p2 = por %p2141_p1, %p2140_p0 }
  0x43   :  { %p2143_p3 = pnand %p2142_p2, %p2136_p13 }
  0x45   :  { %2146 = shalt.err (!%p2143_p3)
}
  0x46   :  { %32 = dma.hbm_to_vmem [thread:$0]  %s2709_s0, 512, %s2378_s22, [#allocation3], %s2271_s25, %s2271_s25, %s2272_s26  }
  0x47   :  { %s2277_s27 = smov [#allocation7]   ;;  %s2278_s29 = smov [#allocation10]  }
  0x48   :  { %s50_s28 = sshll.u32 %s2277_s27, 4  ;;  %s74_s30 = sshll.u32 %s2278_s29, 4  ;;  %s51_s28 = int_to_ptr.vmem [resolvable:$true] %s50_s28  ;;  %s2415_s30 = int_to_ptr.vmem [resolvable:$true] %s74_s30 }
  0x49   :  { %s2147_s13 = scalar_lea.hbm %s2711_s2, 4096 }
  0x4a   :  { %p2148_p4 = scmp.ne.s32.totalorder %s2711_s2, %s2147_s13  ;;  %p2151_p5 = scmp.lt.u32.totalorder %s2147_s13, %s2711_s2 }
  0x4c   :  { %p2153_p6 = pnand %p2151_p5, %p2148_p4 }
  0x4e   :  { %2156 = shalt.err (!%p2153_p6)
}
  0x4f   :  { %s2157_s0 = scalar_lea.vmem %s51_s28, 4096  ;;  %p2162_p8 = scmp.lt.s32.totalorder %s51_s28, %s51_s28 }
  0x50   :  { %p2158_p7 = scmp.ne.s32.totalorder %s51_s28, %s2157_s0  ;;  %p2163_p9 = scmp.lt.s32.totalorder %s2157_s0, %s2157_s0 }
  0x52   :  { %p2164_p10 = por %p2163_p9, %p2162_p8 }
  0x54   :  { %p2165_p11 = pnand %p2164_p10, %p2158_p7 }
  0x56   :  { %2168 = shalt.err (!%p2165_p11)
}
  0x57   :  { %56 = dma.hbm_to_vmem [thread:$0]  %s2711_s2, 4096, %s51_s28, [#allocation6], %s2275_s16, %s2275_s16, %s2276_s12  }
  0x58   :  { %s2169_s23 = scalar_lea.hbm %s2713_s4, 2048 }
  0x59   :  { %p2170_p12 = scmp.ne.s32.totalorder %s2713_s4, %s2169_s23  ;;  %p2173_p13 = scmp.lt.u32.totalorder %s2169_s23, %s2713_s4 }
  0x5b   :  { %p2175_p0 = pnand %p2173_p13, %p2170_p12 }
  0x5d   :  { %2178 = shalt.err (!%p2175_p0)
}
  0x5e   :  { %s2179_s29 = scalar_lea.vmem %s2415_s30, 2048  ;;  %p2184_p2 = scmp.lt.s32.totalorder %s2415_s30, %s2415_s30 }
  0x5f   :  { %p2180_p1 = scmp.ne.s32.totalorder %s2415_s30, %s2179_s29  ;;  %p2185_p3 = scmp.lt.s32.totalorder %s2179_s29, %s2179_s29 }
  0x61   :  { %p2186_p4 = por %p2185_p3, %p2184_p2 }
  0x63   :  { %p2187_p5 = pnand %p2186_p4, %p2180_p1 }
  0x65   :  { %2190 = shalt.err (!%p2187_p5)
}
  0x66   :  { %80 = dma.hbm_to_vmem [thread:$0]  %s2713_s4, 2048, %s2415_s30, [#allocation9], %s2271_s25, %s2271_s25, %s2272_s26  }
  0x67   :  { %s2279_s12 = smov [#allocation13]   ;;  %s2280_s11 = smov [#allocation14]  }
  0x68   :  { %s98_s28 = sshll.u32 %s2279_s12, 4  ;;  %s110_s3 = sshll.u32 %s2280_s11, 4  ;;  %s99_s28 = int_to_ptr.vmem [resolvable:$true] %s98_s28  ;;  %s2452_s3 = int_to_ptr.vmem [resolvable:$true] %s110_s3 }
  0x69   :  { %s2191_s17 = scalar_lea.hbm %s2715_s6, 4096 }
  0x6a   :  { %p2192_p6 = scmp.ne.s32.totalorder %s2715_s6, %s2191_s17  ;;  %p2195_p7 = scmp.lt.u32.totalorder %s2191_s17, %s2715_s6 }
  0x6c   :  { %p2197_p8 = pnand %p2195_p7, %p2192_p6 }
  0x6e   :  { %2200 = shalt.err (!%p2197_p8)
}
  0x6f   :  { %s2201_s4 = scalar_lea.vmem %s99_s28, 4096  ;;  %p2206_p10 = scmp.lt.s32.totalorder %s99_s28, %s99_s28 }
  0x70   :  { %p2202_p9 = scmp.ne.s32.totalorder %s99_s28, %s2201_s4  ;;  %p2207_p11 = scmp.lt.s32.totalorder %s2201_s4, %s2201_s4 }
  0x72   :  { %p2208_p12 = por %p2207_p11, %p2206_p10 }
  0x74   :  { %p2209_p13 = pnand %p2208_p12, %p2202_p9 }
  0x76   :  { %2212 = shalt.err (!%p2209_p13)
}
  0x77   :  { %104 = dma.hbm_to_vmem [thread:$0]  %s2715_s6, 4096, %s99_s28, [#allocation12], %s2271_s25, %s2271_s25, %s2272_s26  }
  0x78   :  { %s2213_s23 = scalar_lea.hbm %s2716_s7, 2048 }
  0x79   :  { %p2214_p0 = scmp.ne.s32.totalorder %s2716_s7, %s2213_s23  ;;  %p2217_p1 = scmp.lt.u32.totalorder %s2213_s23, %s2716_s7 }
  0x7b   :  { %p2219_p2 = pnand %p2217_p1, %p2214_p0 }
  0x7d   :  { %2222 = shalt.err (!%p2219_p2)
}
  0x7e   :  { %s2223_s29 = scalar_lea.vmem %s2452_s3, 2048  ;;  %p2228_p4 = scmp.lt.s32.totalorder %s2452_s3, %s2452_s3 }
  0x7f   :  { %p2224_p3 = scmp.ne.s32.totalorder %s2452_s3, %s2223_s29  ;;  %p2229_p5 = scmp.lt.s32.totalorder %s2223_s29, %s2223_s29 }
  0x81   :  { %p2230_p6 = por %p2229_p5, %p2228_p4 }
  0x83   :  { %p2231_p7 = pnand %p2230_p6, %p2224_p3 }
  0x85   :  { %2234 = shalt.err (!%p2231_p7)
}
  0x86   :  { %116 = dma.hbm_to_vmem [thread:$0]  %s2716_s7, 2048, %s2452_s3, [#allocation15], %s2271_s25, %s2271_s25, %s2272_s26  }
  0x87   :  { %2257 = dma.done.wait [#allocation3], 512  }
  0x88   :  { %2258 = vsyncadd [#allocation3], 4294966784 }
  0x89   :  { %2259 = dma.done.wait [#allocation6], 6144  }
  0x8a   :  { %2260 = vsyncadd [#allocation6], 4294961152 }
  0x8b   :  { %2261 = dma.done.wait [#allocation9], 4096  }
  0x8c   :  { %2262 = vsyncadd [#allocation9], 4294963200 }
  0x8d   :  { %2263 = dma.done.wait [#allocation12], 8192  }
  0x8e   :  { %2264 = vsyncadd [#allocation12], 4294959104 }
  0x8f   :  { %2265 = dma.done.wait [#allocation15], 2048  }
  0x90   :  { %2266 = vsyncadd [#allocation15], 4294965248  ;;  %v2281_v0 = vmov 0.0|0.0   ;;  %vm2282_vm0 = vmmov 0   ;;  %v2283_v1 = vmov 0.0   ;;  %v179_v2 = vld [vmem:[#allocation7 + $0x8] sm:$0xff] }
  0x91   :  { %1782 = vmatprep.subr.bf16.mxu1 %v2281_v0  ;;  %1534 = vmatprep.mubr.msk.f32.mxu1 %vm2282_vm0, %v2283_v1  ;;  %v181_v3 = vld [vmem:[#allocation7 + $0x18] sm:$0xff]  ;;  %v311_v4 = vld [vmem:[#allocation5] sm:$0xff]  ;;  %v312_v6 = vld [vmem:[#allocation5 + $0x8] sm:$0xff]  ;;  %vm336_vm1 = vcmask 1041409   ;;  %vm338_vm2 = vcmask 1042434   ;;  %vm340_vm3 = vcmask 1043459  }
  0x92   :  { %286 = vmatprep.mubr.f32.mxu0 %v2283_v1  ;;  %v1750_v5 = vpack.c.bf16 %v181_v3, %v179_v2  ;;  %v178_v7 = vld [vmem:[#allocation7] sm:$0xff]  ;;  %v180_v8 = vld [vmem:[#allocation7 + $0x10] sm:$0xff]  ;;  %v1783_v9 = vpack.c.bf16 %v312_v6, %v311_v4  ;;  %v183_v11 = vld [vmem:[#allocation7 + $0x28] sm:$0xff]  ;;  %s2285_s14 = smov [#allocation16]  }
  0x93   :  { %v1752_v10 = vpack.c.bf16 %v180_v8, %v178_v7  ;;  %v185_v12 = vld [vmem:[#allocation7 + $0x38] sm:$0xff]  ;;  %v313_v13 = vld [vmem:[#allocation5 + $0x10] sm:$0xff]  ;;  %v182_v16 = vld [vmem:[#allocation7 + $0x20] sm:$0xff]  ;;  %s1324_s19 = sshll.u32 %s2285_s14, 4  ;;  %s1325_s19 = int_to_ptr.vmem [resolvable:$true] %s1324_s19 }
  0x94   :  { %1751 = vmatprep.subr.bf16.mxu0 %v1750_v5  ;;  %v1754_v14 = vpack.c.bf16 %v185_v12, %v183_v11  ;;  %v314_v15 = vld [vmem:[#allocation5 + $0x18] sm:$0xff]  ;;  %v184_v17 = vld [vmem:[#allocation7 + $0x30] sm:$0xff]  ;;  %1784 = vmatpush3.bf16.msra.mxu1 %v1783_v9  ;;  %v187_v20 = vld [vmem:[#allocation7 + $0x48] sm:$0xff]  ;;  %s2235_s21 = scalar_lea.vmem %s1325_s19, 64  ;;  %p2240_p9 = scmp.lt.s32.totalorder %s1325_s19, %s1325_s19 }
  0x95   :  { %1753 = vmatpush1.bf16.msra.mxu0 %v1752_v10  ;;  %v1786_v18 = vpack.c.bf16 %v314_v15, %v313_v13  ;;  %v1756_v19 = vpack.c.bf16 %v184_v17, %v182_v16  ;;  %v189_v21 = vld [vmem:[#allocation7 + $0x58] sm:$0xff]  ;;  %v315_v22 = vld [vmem:[#allocation5 + $0x20] sm:$0xff]  ;;  %1785 = vmatprep.subr.bf16.mxu1 %v2281_v0  ;;  %v316_v24 = vld [vmem:[#allocation5 + $0x28] sm:$0xff]  ;;  %p2236_p8 = scmp.ne.s32.totalorder %s1325_s19, %s2235_s21  ;;  %p2241_p10 = scmp.lt.s32.totalorder %s2235_s21, %s2235_s21 }
  0x96   :  { %1755 = vmatprep.subr.bf16.mxu0 %v1754_v14  ;;  %v1758_v23 = vpack.c.bf16 %v189_v21, %v187_v20  ;;  %v186_v25 = vld [vmem:[#allocation7 + $0x40] sm:$0xff]  ;;  %v188_v26 = vld [vmem:[#allocation7 + $0x50] sm:$0xff]  ;;  %v191_v27 = vld [vmem:[#allocation7 + $0x68] sm:$0xff]  ;;  %v1789_v29 = vpack.c.bf16 %v316_v24, %v315_v22 }
  0x97   :  { %v193_v28 = vld [vmem:[#allocation7 + $0x78] sm:$0xff]  ;;  %v1760_v30 = vpack.c.bf16 %v188_v26, %v186_v25  ;;  %v317_v31 = vld [vmem:[#allocation5 + $0x30] sm:$0xff]  ;;  %v190_v34 = vld [vmem:[#allocation7 + $0x60] sm:$0xff]  ;;  %p2242_p11 = por %p2241_p10, %p2240_p9 }
  0x98   :  { %1787 = vmatpush3.bf16.msra.mxu1 %v1786_v18  ;;  %v1762_v32 = vpack.c.bf16 %v193_v28, %v191_v27  ;;  %v318_v33 = vld [vmem:[#allocation5 + $0x38] sm:$0xff]  ;;  %v192_v35 = vld [vmem:[#allocation7 + $0x70] sm:$0xff]  ;;  %v195_v36 = vld [vmem:[#allocation7 + $0x88] sm:$0xff] }
  0x99   :  { %1757 = vmatpush1.bf16.msra.mxu0 %v1756_v19  ;;  %1788 = vmatprep.subr.bf16.mxu1 %v2281_v0  ;;  %v197_v37 = vld [vmem:[#allocation7 + $0x98] sm:$0xff]  ;;  %v1792_v38 = vpack.c.bf16 %v318_v33, %v317_v31  ;;  %v1764_v39 = vpack.c.bf16 %v192_v35, %v190_v34  ;;  %v319_v40 = vld [vmem:[#allocation5 + $0x40] sm:$0xff]  ;;  %v320_v42 = vld [vmem:[#allocation5 + $0x48] sm:$0xff]  ;;  %p2243_p12 = pnand %p2242_p11, %p2236_p8 }
  0x9a   :  { %1759 = vmatprep.subr.bf16.mxu0 %v1758_v23  ;;  %v1766_v41 = vpack.c.bf16 %v197_v37, %v195_v36  ;;  %v194_v43 = vld [vmem:[#allocation7 + $0x80] sm:$0xff]  ;;  %v196_v44 = vld [vmem:[#allocation7 + $0x90] sm:$0xff]  ;;  %v199_v45 = vld [vmem:[#allocation7 + $0xa8] sm:$0xff]  ;;  %v1795_v49 = vpack.c.bf16 %v320_v42, %v319_v40 }
  0x9b   :  { %v201_v46 = vld [vmem:[#allocation7 + $0xb8] sm:$0xff]  ;;  %v321_v47 = vld [vmem:[#allocation5 + $0x50] sm:$0xff]  ;;  %v1768_v50 = vpack.c.bf16 %v196_v44, %v194_v43  ;;  %v2496_v51 = vld [vmem:[#allocation2] sm:$0xff] }
  0x9c   :  { %1790 = vmatpush3.bf16.msra.mxu1 %v1789_v29  ;;  %v322_v48 = vld [vmem:[#allocation5 + $0x58] sm:$0xff]  ;;  %v2498_v52 = vld [vmem:[#allocation2 + $0x8] sm:$0xff]  ;;  %v2500_v53 = vld [vmem:[#allocation2 + $0x10] sm:$0xff]  ;;  %v1770_v54 = vpack.c.bf16 %v201_v46, %v199_v45  ;;  %v149_v58 = vrot.slane %v2496_v51, 4 }
  0x9d   :  { %1761 = vmatpush1.bf16.msra.mxu0 %v1760_v30  ;;  %1791 = vmatprep.subr.bf16.mxu1 %v2281_v0  ;;  %v198_v55 = vld [vmem:[#allocation7 + $0xa0] sm:$0xff]  ;;  %v200_v56 = vld [vmem:[#allocation7 + $0xb0] sm:$0xff]  ;;  %v2503_v57 = vld [vmem:[#allocation2 + $0x18] sm:$0xff]  ;;  %v155_v59 = vrot.slane %v2498_v52, 4  ;;  %v161_v60 = vrot.slane %v2500_v53, 4  ;;  %v1798_v5 = vpack.c.bf16 %v322_v48, %v321_v47 }
  0x9e   :  { %1763 = vmatprep.subr.bf16.mxu0 %v1762_v32  ;;  %v203_v61 = vld [vmem:[#allocation7 + $0xc8] sm:$0xff]  ;;  %v205_v62 = vld [vmem:[#allocation7 + $0xd8] sm:$0xff]  ;;  %v167_v63 = vrot.slane %v2503_v57, 4  ;;  %v150_v2 = vadd.f32 %v149_v58, %v2496_v51  ;;  %v1772_v6 = vpack.c.bf16 %v200_v56, %v198_v55  ;;  %v323_v7 = vld [vmem:[#allocation5 + $0x60] sm:$0xff] }
  0x9f   :  { %v156_v3 = vadd.f32 %v155_v59, %v2498_v52  ;;  %v162_v4 = vadd.f32 %v161_v60, %v2500_v53  ;;  %v1774_v9 = vpack.c.bf16 %v205_v62, %v203_v61  ;;  %v324_v10 = vld [vmem:[#allocation5 + $0x68] sm:$0xff]  ;;  %v202_v11 = vld [vmem:[#allocation7 + $0xc0] sm:$0xff]  ;;  %v204_v12 = vld [vmem:[#allocation7 + $0xd0] sm:$0xff] }
  0xa0   :  { %1793 = vmatpush3.bf16.msra.mxu1 %v1792_v38  ;;  %v168_v8 = vadd.f32 %v167_v63, %v2503_v57  ;;  %v151_v13 = vrot.slane %v150_v2, 2  ;;  %v207_v16 = vld [vmem:[#allocation7 + $0xe8] sm:$0xff]  ;;  %v209_v17 = vld [vmem:[#allocation7 + $0xf8] sm:$0xff]  ;;  %v1801_v22 = vpack.c.bf16 %v324_v10, %v323_v7  ;;  %v1776_v23 = vpack.c.bf16 %v204_v12, %v202_v11  ;;  %v325_v24 = vld [vmem:[#allocation5 + $0x70] sm:$0xff] }
  0xa1   :  { %1765 = vmatpush1.bf16.msra.mxu0 %v1764_v39  ;;  %1794 = vmatprep.subr.bf16.mxu1 %v2281_v0  ;;  %v157_v14 = vrot.slane %v156_v3, 2  ;;  %v163_v15 = vrot.slane %v162_v4, 2  ;;  %v1778_v26 = vpack.c.bf16 %v209_v17, %v207_v16  ;;  %v326_v27 = vld [vmem:[#allocation5 + $0x78] sm:$0xff]  ;;  %v206_v28 = vld [vmem:[#allocation7 + $0xe0] sm:$0xff]  ;;  %v208_v29 = vld [vmem:[#allocation7 + $0xf0] sm:$0xff] }
  0xa2   :  { %1767 = vmatprep.subr.bf16.mxu0 %v1766_v41  ;;  %v169_v18 = vrot.slane %v168_v8, 2  ;;  %v152_v19 = vadd.f32 %v151_v13, %v150_v2  ;;  %v462_v34 = vld [vmem:[#allocation8] sm:$0xff]  ;;  %v463_v35 = vld [vmem:[#allocation8 + $0x8] sm:$0xff]  ;;  %v1804_v39 = vpack.c.bf16 %v326_v27, %v325_v24  ;;  %v1780_v40 = vpack.c.bf16 %v208_v29, %v206_v28  ;;  %v464_v47 = vld [vmem:[#allocation8 + $0x10] sm:$0xff] }
  0xa3   :  { %v158_v20 = vadd.f32 %v157_v14, %v156_v3  ;;  %v164_v21 = vadd.f32 %v163_v15, %v162_v4  ;;  %v1806_v45 = vpack.c.bf16 %v463_v35, %v462_v34  ;;  %v465_v48 = vld [vmem:[#allocation8 + $0x18] sm:$0xff]  ;;  %v466_v56 = vld [vmem:[#allocation8 + $0x20] sm:$0xff]  ;;  %v467_v58 = vld [vmem:[#allocation8 + $0x28] sm:$0xff]  ;;  %v2284_v11 = vmov 1966171168  }
  0xa4   :  { %1796 = vmatpush3.bf16.msra.mxu1 %v1795_v49  ;;  %v170_v25 = vadd.f32 %v169_v18, %v168_v8  ;;  %v153_v30 = vrot.slane %v152_v19, 1  ;;  %v1810_v55 = vpack.c.bf16 %v465_v48, %v464_v47  ;;  %v1814_v59 = vpack.c.bf16 %v467_v58, %v466_v56  ;;  %v468_v60 = vld [vmem:[#allocation8 + $0x30] sm:$0xff]  ;;  %v469_v61 = vld [vmem:[#allocation8 + $0x38] sm:$0xff]  ;;  %v470_v63 = vld [vmem:[#allocation8 + $0x40] sm:$0xff] }
  0xa5   :  { %1769 = vmatpush1.bf16.msra.mxu0 %v1768_v50  ;;  %1797 = vmatprep.subr.bf16.mxu1 %v2281_v0  ;;  %v159_v31 = vrot.slane %v158_v20, 1  ;;  %v165_v32 = vrot.slane %v164_v21, 1  ;;  %v1818_v62 = vpack.c.bf16 %v469_v61, %v468_v60  ;;  %v471_v2 = vld [vmem:[#allocation8 + $0x48] sm:$0xff]  ;;  %v473_v3 = vld [vmem:[#allocation8 + $0x58] sm:$0xff]  ;;  %v415_v12 = vunpack.c.l.s4 %v2284_v11  ;;  %v1337_v16 = vld [vmem:[%s2717_s8] ss:$0 sm:$0xff] }
  0xa6   :  { %1771 = vmatprep.subr.bf16.mxu0 %v1770_v54  ;;  %v171_v33 = vrot.slane %v170_v25, 1  ;;  %v154_v36 = vadd.f32 %v153_v30, %v152_v19  ;;  %v477_v8 = vld [vmem:[#allocation8 + $0x78] sm:$0xff]  ;;  %v210_v15 = vld [vmem:[%s2718_s9] ss:$2 sm:$0x3]  ;;  %v660_v60 = vld [vmem:[#allocation10 + $0x8] sm:$0xff] }
  0xa7   :  { %v160_v37 = vadd.f32 %v159_v31, %v158_v20  ;;  %v166_v38 = vadd.f32 %v165_v32, %v164_v21  ;;  %v416_v14 = vunpack.c.0.s8 %v415_v12  ;;  %v661_v61 = vld [vmem:[#allocation10 + $0x10] sm:$0xff]  ;;  %v671_v12 = vld [vmem:[#allocation10 + $0x60] sm:$0xff] }
  0xa8   :  { %1799 = vmatpush3.bf16.msra.mxu1 %v1798_v5  ;;  %v172_v41 = vadd.f32 %v171_v33, %v170_v25  ;;  %v174_v42 = vmul.f32 0.125, %v154_v36  ;;  %v474_v5 = vld [vmem:[#allocation8 + $0x60] sm:$0xff] }
  0xa9   :  { %1773 = vmatpush1.bf16.msra.mxu0 %v1772_v6  ;;  %1800 = vmatprep.subr.bf16.mxu1 %v2281_v0  ;;  %v175_v43 = vmul.f32 0.125, %v160_v37  ;;  %v176_v44 = vmul.f32 0.125, %v166_v38  ;;  %v475_v6 = vld [vmem:[#allocation8 + $0x68] sm:$0xff] }
  0xaa   :  { %1775 = vmatprep.subr.bf16.mxu0 %v1774_v9  ;;  %v177_v46 = vmul.f32 0.125, %v172_v41  ;;  %v1830_v7 = vpack.c.bf16 %v475_v6, %v474_v5  ;;  %v666_v5 = vld [vmem:[#allocation10 + $0x38] sm:$0xff] }
  0xab   :  { %v337_v49 = vsel %vm336_vm1, %v175_v43, %v174_v42 }
  0xac   :  { %1802 = vmatpush3.bf16.msra.mxu1 %v1801_v22  ;;  %v339_v50 = vsel %vm338_vm2, %v176_v44, %v337_v49 }
  0xad   :  { %1777 = vmatpush1.bf16.msra.mxu0 %v1776_v23  ;;  %1803 = vmatprep.subr.bf16.mxu1 %v2281_v0  ;;  %v2519_v54 = vsel %vm340_vm3, %v177_v46, %v339_v50 }
  0xae   :  { %1779 = vmatprep.subr.bf16.mxu0 %v1778_v26 }
  0xb0   :  { %1805 = vmatpush3.bf16.msra.mxu1 %v1804_v39 }
  0xb1   :  { %1781 = vmatpush1.bf16.msra.mxu0 %v1780_v40  ;;  %1838 = vmatprep.subr.bf16.mxu1 %v2281_v0 }
  0xb2   :  { %1807 = vmatprep.subr.bf16.mxu0 %v1806_v45 }
  0xb3   :  { %1535 = vmatmul.mubr.f32.vlgmr.msra.gmra.mrb[0].mxu1 %v2519_v54 }
  0xb4   :  { %287 = vmatmul.mubr.f32.vlgmr.msra.gmra.mrb[0].mxu0 %v2496_v51  ;;  %1607 = vmatprep.mubr.msk.f32.mxu1 %vm2282_vm0, %v2283_v1  ;;  %v1822_v51 = vpack.c.bf16 %v471_v2, %v470_v63  ;;  %v662_v63 = vld [vmem:[#allocation10 + $0x18] sm:$0xff] }
  0xb5   :  { %292 = vmatprep.mubr.f32.mxu0 %v2283_v1  ;;  %1809 = vmatpush3.bf16.msra.mxu0 %v1806_v45  ;;  %v1842_v2 = vpack.c.bf16 %v662_v63, %v661_v61 }
  0xb6   :  { %1811 = vmatprep.subr.bf16.mxu0 %v1810_v55 }
  0xb8   :  { %293 = vmatmul.mubr.f32.gmra.mrb[2].mxu0 %v2498_v52  ;;  %v472_v52 = vld [vmem:[#allocation8 + $0x50] sm:$0xff] }
  0xb9   :  { %298 = vmatprep.mubr.f32.mxu0 %v2283_v1  ;;  %1813 = vmatpush3.bf16.msra.mxu0 %v1810_v55  ;;  %v1826_v4 = vpack.c.bf16 %v473_v3, %v472_v52  ;;  %v664_v52 = vld [vmem:[#allocation10 + $0x28] sm:$0xff] }
  0xba   :  { %1815 = vmatprep.subr.bf16.mxu0 %v1814_v59 }
  0xbc   :  { %299 = vmatmul.mubr.f32.gmra.mrb[4].mxu0 %v2500_v53  ;;  %v476_v53 = vld [vmem:[#allocation8 + $0x70] sm:$0xff] }
  0xbd   :  { %304 = vmatprep.mubr.f32.mxu0 %v2283_v1  ;;  %1817 = vmatpush3.bf16.msra.mxu0 %v1814_v59  ;;  %v1834_v9 = vpack.c.bf16 %v477_v8, %v476_v53  ;;  %v659_v59 = vld [vmem:[#allocation10] sm:$0xff]  ;;  %v668_v53 = vld [vmem:[#allocation10 + $0x48] sm:$0xff] }
  0xbe   :  { %1819 = vmatprep.subr.bf16.mxu0 %v1818_v62 }
  0xc0   :  { %305 = vmatmul.mubr.f32.gmra.mrb[6].mxu0 %v2503_v57  ;;  %v212_v57 = vlaneseq }
  0xc1   :  { %1821 = vmatpush3.bf16.msra.mxu0 %v1818_v62  ;;  %v1839_v62 = vpack.c.bf16 %v660_v60, %v659_v59 }
  0xc2   :  { %1823 = vmatprep.subr.bf16.mxu0 %v1822_v51  ;;  %v2533_v10 = vshrl.u32 %v212_v57, 7  ;;  %v670_v57 = vld [vmem:[#allocation10 + $0x58] sm:$0xff] }
  0xc3   :  { %1840 = vmatpush3.bf16.msra.mxu1 %v1839_v62 }
  0xc4   :  { %v218_v13 = vsub.s32 1, %v2533_v10  ;;  %v2545_v18 = vsub.s32 0, %v2533_v10  ;;  %v419_v19 = vsub.s32 %v416_v14, %v2533_v10  ;;  %1841 = vmatprep.subr.bf16.mxu1 %v2281_v0  ;;  %v672_v14 = vld [vmem:[#allocation10 + $0x68] sm:$0xff]  ;;  %v1342_v10 = vld [vmem:[%s2717_s8 + $0x2] ss:$0 sm:$0xff] }
  0xc5   :  { %1825 = vmatpush3.bf16.msra.mxu0 %v1822_v51  ;;  %v663_v51 = vld [vmem:[#allocation10 + $0x20] sm:$0xff] }
  0xc6   :  { %1827 = vmatprep.subr.bf16.mxu0 %v1826_v4  ;;  %v219_v17 = vrot.slane %v210_v15, %v218_v13  ;;  %v215_v27 = vrot.slane %v210_v15, %v2545_v18  ;;  %v1845_v3 = vpack.c.bf16 %v664_v52, %v663_v51  ;;  %v1857_v15 = vpack.c.bf16 %v672_v14, %v671_v12 }
  0xc7   :  { %1843 = vmatpush3.bf16.msra.mxu1 %v1842_v2 }
  0xc8   :  { %1844 = vmatprep.subr.bf16.mxu1 %v2281_v0 }
  0xc9   :  { %1829 = vmatpush3.bf16.msra.mxu0 %v1826_v4  ;;  %v665_v4 = vld [vmem:[#allocation10 + $0x30] sm:$0xff] }
  0xca   :  { %1831 = vmatprep.subr.bf16.mxu0 %v1830_v7  ;;  %v1848_v6 = vpack.c.bf16 %v666_v5, %v665_v4 }
  0xcb   :  { %1846 = vmatpush3.bf16.msra.mxu1 %v1845_v3 }
  0xcc   :  { %1847 = vmatprep.subr.bf16.mxu1 %v2281_v0 }
  0xcd   :  { %1833 = vmatpush3.bf16.msra.mxu0 %v1830_v7  ;;  %v667_v7 = vld [vmem:[#allocation10 + $0x40] sm:$0xff] }
  0xce   :  { %1835 = vmatprep.subr.bf16.mxu0 %v1834_v9  ;;  %v1851_v8 = vpack.c.bf16 %v668_v53, %v667_v7 }
  0xcf   :  { %1849 = vmatpush3.bf16.msra.mxu1 %v1848_v6 }
  0xd0   :  { %1850 = vmatprep.subr.bf16.mxu1 %v2281_v0 }
  0xd1   :  { %1837 = vmatpush3.bf16.msra.mxu0 %v1834_v9  ;;  %v669_v9 = vld [vmem:[#allocation10 + $0x50] sm:$0xff] }
  0xd2   :  { %1862 = vmatprep.subr.bf16.mxu0 %v2281_v0  ;;  %v1854_v11 = vpack.c.bf16 %v670_v57, %v669_v9 }
  0xd3   :  { %1852 = vmatpush3.bf16.msra.mxu1 %v1851_v8 }
  0xd4   :  { %1853 = vmatprep.subr.bf16.mxu1 %v2281_v0 }
  0xd7   :  { %1855 = vmatpush3.bf16.msra.mxu1 %v1854_v11 }
  0xd8   :  { %1856 = vmatprep.subr.bf16.mxu1 %v2281_v0 }
  0xdb   :  { %1858 = vmatpush3.bf16.msra.mxu1 %v1857_v15 }
  0xdc   :  { %1859 = vmatprep.subr.bf16.mxu1 %v2281_v0 }
 0x186   :  { %v409_v20 = vpop.f32.mrb[0].mxu1 }
 0x187   :  { %v288_v21 = vpop.f32.mrb[0].mxu0  ;;  %v410_v22 = vadd.f32 %v1337_v16, %v409_v20  ;;  %v1536_v23 = vpop.f32.mrb[1].mxu1  ;;  %v673_v16 = vld [vmem:[#allocation10 + $0x70] sm:$0xff]  ;;  %v759_v20 = vld [vmem:[#allocation14] sm:$0xff] }
 0x188   :  { %v290_v24 = vpop.f32.mrb[1].mxu0  ;;  %v289_v33 = vadd.f32 %v288_v21, %v215_v27  ;;  %v760_v21 = vld [vmem:[#allocation14 + $0x8] sm:$0xff] }
 0x189   :  { %v2548_v25 = vadd.f32 %v290_v24, %v219_v17  ;;  %v420_v26 = vrot.slane %v410_v22, %v419_v19  ;;  %v761_v22 = vld [vmem:[#allocation14 + $0x10] sm:$0xff]  ;;  %v2571_v23 = vpack.c.bf16 %v760_v21, %v759_v20  ;;  %v762_v24 = vld [vmem:[#allocation14 + $0x18] sm:$0xff] }
 0x18b   :  { %v294_v28 = vpop.f32.mrb[2].mxu0  ;;  %v421_v29 = vcombine.high %v420_v26, %v420_v26  ;;  %v428_v30 = vrot.slane %v420_v26, %v419_v19  ;;  %v2574_v26 = vpack.c.bf16 %v762_v24, %v761_v22 }
 0x18c   :  { %v296_v31 = vpop.f32.mrb[3].mxu0  ;;  %v295_v37 = vadd.f32 %v294_v28, %v215_v27  ;;  %v764_v28 = vld [vmem:[#allocation14 + $0x28] sm:$0xff] }
 0x18d   :  { %v2551_v32 = vadd.f32 %v296_v31, %v219_v17  ;;  %v441_v34 = vrot.slane %v428_v30, %v2545_v18  ;;  %v435_v35 = vrot.slane %v421_v29, %v419_v19  ;;  %v436_v36 = vcombine.high %v428_v30, %v428_v30  ;;  %v765_v30 = vld [vmem:[#allocation14 + $0x30] sm:$0xff]  ;;  %v766_v31 = vld [vmem:[#allocation14 + $0x38] sm:$0xff] }
 0x18f   :  { %v300_v38 = vpop.f32.mrb[4].mxu0  ;;  %v458_v39 = vmul.f32 %v441_v34, %v289_v33  ;;  %v445_v40 = vrot.slane %v435_v35, %v2545_v18  ;;  %v449_v42 = vrot.slane %v436_v36, %v2545_v18  ;;  %v437_v45 = vcombine.high %v435_v35, %v435_v35  ;;  %v767_v34 = vld [vmem:[#allocation14 + $0x40] sm:$0xff]  ;;  %v768_v35 = vld [vmem:[#allocation14 + $0x48] sm:$0xff] }
 0x190   :  { %v301_v41 = vadd.f32 %v300_v38, %v215_v27  ;;  %v302_v43 = vpop.f32.mrb[5].mxu0  ;;  %v2582_v33 = vpack.c.bf16 %v766_v31, %v765_v30  ;;  %v2586_v36 = vpack.c.bf16 %v768_v35, %v767_v34  ;;  %v770_v38 = vld [vmem:[#allocation14 + $0x58] sm:$0xff] }
 0x191   :  { %v2556_v44 = vadd.f32 %v302_v43, %v219_v17  ;;  %v459_v46 = vmul.f32 %v445_v40, %v295_v37  ;;  %1569 = vmatprep.mubr.f32.mxu0 %v458_v39  ;;  %v453_v50 = vrot.slane %v437_v45, %v2545_v18  ;;  %v769_v37 = vld [vmem:[#allocation14 + $0x50] sm:$0xff]  ;;  %v771_v40 = vld [vmem:[#allocation14 + $0x60] sm:$0xff] }
 0x192   :  { %v460_v47 = vmul.f32 %v449_v42, %v301_v41  ;;  %v2590_v39 = vpack.c.bf16 %v770_v38, %v769_v37  ;;  %v772_v41 = vld [vmem:[#allocation14 + $0x68] sm:$0xff] }
 0x193   :  { %v306_v48 = vpop.f32.mrb[6].mxu0  ;;  %1570 = vmatmul.mubr.f32.vlgmr.msra.gmra.mrb[8].mxu0 %v459_v46  ;;  %v2594_v42 = vpack.c.bf16 %v772_v41, %v771_v40 }
 0x194   :  { %v307_v49 = vadd.f32 %v306_v48, %v215_v27  ;;  %v308_v55 = vpop.f32.mrb[7].mxu0  ;;  %1572 = vmatprep.mubr.f32.mxu0 %v460_v47  ;;  %1864 = vmatpush3.bf16.msra.mxu0 %v2571_v23  ;;  %v763_v27 = vld [vmem:[#allocation14 + $0x20] sm:$0xff] }
 0x195   :  { %v2559_v56 = vadd.f32 %v308_v55, %v219_v17  ;;  %v674_v17 = vld [vmem:[#allocation10 + $0x78] sm:$0xff]  ;;  %1865 = vmatprep.subr.bf16.mxu0 %v2281_v0  ;;  %v2578_v29 = vpack.c.bf16 %v764_v28, %v763_v27 }
 0x196   :  { %v461_v58 = vmul.f32 %v453_v50, %v307_v49  ;;  %v1860_v19 = vpack.c.bf16 %v674_v17, %v673_v16 }
 0x198   :  { %1573 = vmatmul.mubr.f32.gmra.mrb[10].mxu0 %v461_v58  ;;  %1861 = vmatpush3.bf16.msra.mxu1 %v1860_v19 }
 0x199   :  { %1642 = vmatprep.mubr.msk.f32.mxu0 %vm2282_vm0, %v2283_v1  ;;  %1886 = vmatprep.subr.bf16.mxu1 %v2281_v0 }
 0x19a   :  { %1867 = vmatpush3.bf16.msra.mxu0 %v2574_v26 }
 0x19b   :  { %1868 = vmatprep.subr.bf16.mxu0 %v2281_v0 }
 0x19e   :  { %1870 = vmatpush3.bf16.msra.mxu0 %v2578_v29 }
 0x19f   :  { %1871 = vmatprep.subr.bf16.mxu0 %v2281_v0 }
 0x1a2   :  { %1873 = vmatpush3.bf16.msra.mxu0 %v2582_v33 }
 0x1a3   :  { %1874 = vmatprep.subr.bf16.mxu0 %v2281_v0 }
 0x1a6   :  { %1876 = vmatpush3.bf16.msra.mxu0 %v2586_v36 }
 0x1a7   :  { %1877 = vmatprep.subr.bf16.mxu0 %v2281_v0 }
 0x1aa   :  { %1879 = vmatpush3.bf16.msra.mxu0 %v2590_v39 }
 0x1ab   :  { %1880 = vmatprep.subr.bf16.mxu0 %v2281_v0 }
 0x1ae   :  { %1882 = vmatpush3.bf16.msra.mxu0 %v2594_v42 }
 0x1af   :  { %1883 = vmatprep.subr.bf16.mxu0 %v2281_v0 }
 0x266   :  { %v1571_v43 = vpop.f32.mrb[8].mxu0 }
 0x267   :  { %v569_v45 = vrot.slane %v1571_v43, 4  ;;  %v544_v46 = vpop.f32.mrb[9].mxu0 }
 0x268   :  { %v563_v47 = vrot.slane %v544_v46, 4 }
 0x269   :  { %v570_v48 = vmax.f32 %v1571_v43, %v569_v45 }
 0x26a   :  { %v564_v49 = vmax.f32 %v544_v46, %v563_v47 }
 0x26b   :  { %v1574_v50 = vpop.f32.mrb[10].mxu0  ;;  %v571_v55 = vrot.slane %v570_v48, 2 }
 0x26c   :  { %v581_v58 = vrot.slane %v1574_v50, 4  ;;  %v554_v59 = vpop.f32.mrb[11].mxu0  ;;  %v565_v60 = vrot.slane %v564_v49, 2 }
 0x26d   :  { %v575_v61 = vrot.slane %v554_v59, 4  ;;  %v572_v62 = vmax.f32 %v570_v48, %v571_v55 }
 0x26e   :  { %v582_v63 = vmax.f32 %v1574_v50, %v581_v58  ;;  %v566_v2 = vmax.f32 %v564_v49, %v565_v60 }
 0x26f   :  { %v576_v51 = vmax.f32 %v554_v59, %v575_v61  ;;  %v573_v52 = vrot.slane %v572_v62, 1 }
 0x270   :  { %v583_v3 = vrot.slane %v582_v63, 2  ;;  %v567_v4 = vrot.slane %v566_v2, 1 }
 0x271   :  { %v577_v5 = vrot.slane %v576_v51, 2  ;;  %v574_v6 = vmax.f32 %v572_v62, %v573_v52 }
 0x272   :  { %v584_v7 = vmax.f32 %v582_v63, %v583_v3  ;;  %v568_v53 = vmax.f32 %v566_v2, %v567_v4 }
 0x273   :  { %v578_v8 = vmax.f32 %v576_v51, %v577_v5  ;;  %v588_v9 = vsub.f32 %v1571_v43, %v574_v6 }
 0x274   :  { %v585_v57 = vrot.slane %v584_v7, 1  ;;  %v587_v11 = vsub.f32 %v544_v46, %v568_v53 }
 0x275   :  { %v579_v12 = vrot.slane %v578_v8, 1  ;;  %v593_v14 = vmul.f32 1.442695, %v588_v9 }
 0x276   :  { %v586_v15 = vmax.f32 %v584_v7, %v585_v57  ;;  %v591_v16 = vmul.f32 1.442695, %v587_v11 }
 0x277   :  { %v580_v17 = vmax.f32 %v578_v8, %v579_v12  ;;  %2039 = vpow2.f32 %v593_v14 }
 0x278   :  { %v590_v19 = vsub.f32 %v1574_v50, %v586_v15  ;;  %2041 = vpow2.f32 %v591_v16 }
 0x279   :  { %v589_v20 = vsub.f32 %v554_v59, %v580_v17 }
 0x27a   :  { %v597_v21 = vmul.f32 1.442695, %v590_v19 }
 0x27b   :  { %v595_v22 = vmul.f32 1.442695, %v589_v20 }
 0x27c   :  { %2043 = vpow2.f32 %v597_v21 }
 0x27d   :  { %2045 = vpow2.f32 %v595_v22 }
 0x281   :  { %v2040_v24 = vpop.eup %2039 }
 0x282   :  { %v2042_v27 = vpop.eup %2041  ;;  %v605_v28 = vrot.slane %v2040_v24, 4 }
 0x283   :  { %v599_v30 = vrot.slane %v2042_v27, 4 }
 0x284   :  { %v606_v31 = vadd.f32 %v2040_v24, %v605_v28 }
 0x285   :  { %v600_v35 = vadd.f32 %v2042_v27, %v599_v30 }
 0x286   :  { %v2044_v34 = vpop.eup %2043  ;;  %v607_v38 = vrot.slane %v606_v31, 2 }
 0x287   :  { %v2046_v37 = vpop.eup %2045  ;;  %v617_v40 = vrot.slane %v2044_v34, 4  ;;  %v601_v41 = vrot.slane %v600_v35, 2 }
 0x288   :  { %v611_v43 = vrot.slane %v2046_v37, 4  ;;  %v608_v45 = vadd.f32 %v607_v38, %v606_v31 }
 0x289   :  { %v618_v46 = vadd.f32 %v2044_v34, %v617_v40  ;;  %v602_v47 = vadd.f32 %v601_v41, %v600_v35 }
 0x28a   :  { %v612_v48 = vadd.f32 %v2046_v37, %v611_v43  ;;  %v609_v49 = vrot.slane %v608_v45, 1 }
 0x28b   :  { %v619_v50 = vrot.slane %v618_v46, 2  ;;  %v603_v55 = vrot.slane %v602_v47, 1 }
 0x28c   :  { %v613_v58 = vrot.slane %v612_v48, 2  ;;  %v610_v59 = vadd.f32 %v609_v49, %v608_v45  ;;  %v773_v49 = vld [vmem:[#allocation14 + $0x70] sm:$0xff] }
 0x28d   :  { %v620_v60 = vadd.f32 %v619_v50, %v618_v46  ;;  %v604_v62 = vadd.f32 %v603_v55, %v602_v47  ;;  %v774_v50 = vld [vmem:[#allocation14 + $0x78] sm:$0xff] }
 0x28e   :  { %v614_v61 = vadd.f32 %v613_v58, %v612_v48  ;;  %2047 = vrcp.f32 %v610_v59  ;;  %v2622_v55 = vpack.c.bf16 %v774_v50, %v773_v49  ;;  %v1338_v58 = vld [vmem:[%s2717_s8 + $0x1] ss:$0 sm:$0xff]  ;;  %v957_v49 = vld [vmem:[#allocation11 + $0xd0] sm:$0xff]  ;;  %v960_v50 = vld [vmem:[#allocation11 + $0xe8] sm:$0xff] }
 0x28f   :  { %v621_v63 = vrot.slane %v620_v60, 1  ;;  %2049 = vrcp.f32 %v604_v62 }
 0x290   :  { %v615_v2 = vrot.slane %v614_v61, 1  ;;  %1885 = vmatpush3.bf16.msra.mxu0 %v2622_v55 }
 0x291   :  { %v622_v51 = vadd.f32 %v621_v63, %v620_v60  ;;  %v932_v63 = vld [vmem:[#allocation11 + $0x8] sm:$0xff] }
 0x292   :  { %v616_v52 = vadd.f32 %v615_v2, %v614_v61  ;;  %v934_v2 = vld [vmem:[#allocation11 + $0x18] sm:$0xff] }
 0x293   :  { %2051 = vrcp.f32 %v622_v51  ;;  %v931_v51 = vld [vmem:[#allocation11] sm:$0xff] }
 0x294   :  { %2053 = vrcp.f32 %v616_v52  ;;  %v1910_v52 = vpack.c.bf16 %v934_v2, %v932_v63  ;;  %v1069_v2 = vld [vmem:[#allocation13 + $0x80] sm:$0xff] }
 0x296   :  { %1911 = vmatprep.subr.bf16.mxu0 %v1910_v52  ;;  %v1053_v52 = vld [vmem:[#allocation13] sm:$0xff] }
 0x298   :  { %v2048_v3 = vpop.eup %2047 }
 0x299   :  { %v2050_v4 = vpop.eup %2049  ;;  %v628_v5 = vmul.f32 %v2048_v3, %v2040_v24  ;;  %v933_v3 = vld [vmem:[#allocation11 + $0x10] sm:$0xff] }
 0x29a   :  { %v627_v6 = vmul.f32 %v2050_v4, %v2042_v27  ;;  %v936_v4 = vld [vmem:[#allocation11 + $0x28] sm:$0xff] }
 0x29b   :  { %v632_v7 = vmul.f32 %v628_v5, %v2551_v32  ;;  %v938_v5 = vld [vmem:[#allocation11 + $0x38] sm:$0xff] }
 0x29c   :  { %v631_v8 = vmul.f32 %v627_v6, %v2548_v25  ;;  %v1912_v6 = vpack.c.bf16 %v933_v3, %v931_v51  ;;  %v1070_v51 = vld [vmem:[#allocation13 + $0x88] sm:$0xff] }
 0x29d   :  { %v2052_v53 = vpop.eup %2051  ;;  %v641_v11 = vrot.slane %v632_v7, 4  ;;  %v1942_v3 = vpack.c.bf16 %v1070_v51, %v1069_v2  ;;  %v1083_v2 = vld [vmem:[#allocation13 + $0xf0] sm:$0xff]  ;;  %v1084_v51 = vld [vmem:[#allocation13 + $0xf8] sm:$0xff] }
 0x29e   :  { %v2054_v9 = vpop.eup %2053  ;;  %v630_v57 = vmul.f32 %v2052_v53, %v2044_v34  ;;  %v635_v14 = vrot.slane %v631_v8, 4  ;;  %v935_v53 = vld [vmem:[#allocation11 + $0x20] sm:$0xff] }
 0x29f   :  { %v629_v12 = vmul.f32 %v2054_v9, %v2046_v37  ;;  %v642_v16 = vadd.f32 %v641_v11, %v632_v7  ;;  %v1914_v7 = vpack.c.bf16 %v938_v5, %v936_v4  ;;  %v940_v9 = vld [vmem:[#allocation11 + $0x48] sm:$0xff]  ;;  %v1071_v5 = vld [vmem:[#allocation13 + $0x90] sm:$0xff] }
 0x2a0   :  { %v634_v15 = vmul.f32 %v630_v57, %v2559_v56  ;;  %v636_v19 = vadd.f32 %v635_v14, %v631_v8  ;;  %v937_v8 = vld [vmem:[#allocation11 + $0x30] sm:$0xff]  ;;  %v942_v57 = vld [vmem:[#allocation11 + $0x58] sm:$0xff]  ;;  %v1054_v4 = vld [vmem:[#allocation13 + $0x8] sm:$0xff] }
 0x2a1   :  { %v633_v17 = vmul.f32 %v629_v12, %v2556_v44  ;;  %v643_v20 = vrot.slane %v642_v16, 2  ;;  %v1916_v11 = vpack.c.bf16 %v937_v8, %v935_v53  ;;  %v939_v12 = vld [vmem:[#allocation11 + $0x40] sm:$0xff]  ;;  %v941_v14 = vld [vmem:[#allocation11 + $0x50] sm:$0xff] }
 0x2a2   :  { %v653_v21 = vrot.slane %v634_v15, 4  ;;  %v637_v22 = vrot.slane %v636_v19, 2  ;;  %v1055_v8 = vld [vmem:[#allocation13 + $0x10] sm:$0xff] }
 0x2a3   :  { %v647_v24 = vrot.slane %v633_v17, 4  ;;  %v644_v27 = vadd.f32 %v643_v20, %v642_v16 }
 0x2a4   :  { %v654_v32 = vadd.f32 %v653_v21, %v634_v15  ;;  %v638_v28 = vadd.f32 %v637_v22, %v636_v19  ;;  %v1920_v15 = vpack.c.bf16 %v941_v14, %v939_v12  ;;  %v944_v21 = vld [vmem:[#allocation11 + $0x68] sm:$0xff]  ;;  %v946_v22 = vld [vmem:[#allocation11 + $0x78] sm:$0xff]  ;;  %v1057_v14 = vld [vmem:[#allocation13 + $0x20] sm:$0xff] }
 0x2a5   :  { %v648_v30 = vadd.f32 %v647_v24, %v633_v17  ;;  %v645_v25 = vrot.slane %v644_v27, 1  ;;  %v1922_v24 = vpack.c.bf16 %v946_v22, %v944_v21  ;;  %v1059_v22 = vld [vmem:[#allocation13 + $0x30] sm:$0xff] }
 0x2a6   :  { %v655_v31 = vrot.slane %v654_v32, 2  ;;  %v639_v34 = vrot.slane %v638_v28, 1 }
 0x2a7   :  { %v649_v35 = vrot.slane %v648_v30, 2  ;;  %v646_v37 = vadd.f32 %v645_v25, %v644_v27  ;;  %v943_v27 = vld [vmem:[#allocation11 + $0x60] sm:$0xff]  ;;  %v950_v25 = vld [vmem:[#allocation11 + $0x98] sm:$0xff] }
 0x2a8   :  { %v656_v38 = vadd.f32 %v655_v31, %v654_v32  ;;  %v640_v40 = vadd.f32 %v639_v34, %v638_v28  ;;  %v945_v32 = vld [vmem:[#allocation11 + $0x70] sm:$0xff]  ;;  %v947_v34 = vld [vmem:[#allocation11 + $0x80] sm:$0xff] }
 0x2a9   :  { %v650_v56 = vadd.f32 %v649_v35, %v648_v30  ;;  %v1924_v28 = vpack.c.bf16 %v945_v32, %v943_v27  ;;  %v948_v30 = vld [vmem:[#allocation11 + $0x88] sm:$0xff]  ;;  %v949_v35 = vld [vmem:[#allocation11 + $0x90] sm:$0xff]  ;;  %v1077_v27 = vld [vmem:[#allocation13 + $0xc0] sm:$0xff] }
 0x2aa   :  { %v657_v41 = vrot.slane %v656_v38, 1  ;;  %v684_v44 = vsel %vm336_vm1, %v646_v37, %v640_v40  ;;  %v1926_v31 = vpack.c.bf16 %v950_v25, %v948_v30  ;;  %v952_v37 = vld [vmem:[#allocation11 + $0xa8] sm:$0xff]  ;;  %v954_v40 = vld [vmem:[#allocation11 + $0xb8] sm:$0xff]  ;;  %v1061_v25 = vld [vmem:[#allocation13 + $0x40] sm:$0xff] }
 0x2ab   :  { %v651_v43 = vrot.slane %v650_v56, 1  ;;  %v1078_v32 = vld [vmem:[#allocation13 + $0xc8] sm:$0xff] }
 0x2ac   :  { %v658_v46 = vadd.f32 %v657_v41, %v656_v38  ;;  %v1928_v38 = vpack.c.bf16 %v949_v35, %v947_v34  ;;  %v953_v41 = vld [vmem:[#allocation11 + $0xb0] sm:$0xff]  ;;  %v1958_v30 = vpack.c.bf16 %v1078_v32, %v1077_v27  ;;  %v1080_v35 = vld [vmem:[#allocation13 + $0xd8] sm:$0xff] }
 0x2ad   :  { %v652_v45 = vadd.f32 %v651_v43, %v650_v56  ;;  %v951_v56 = vld [vmem:[#allocation11 + $0xa0] sm:$0xff]  ;;  %v1930_v43 = vpack.c.bf16 %v954_v40, %v952_v37  ;;  %v1079_v34 = vld [vmem:[#allocation13 + $0xd0] sm:$0xff] }
 0x2ae   :  { %v1063_v40 = vld [vmem:[#allocation13 + $0x50] sm:$0xff] }
 0x2af   :  { %v685_v47 = vsel %vm338_vm2, %v652_v45, %v684_v44  ;;  %v956_v44 = vld [vmem:[#allocation11 + $0xc8] sm:$0xff]  ;;  %v958_v45 = vld [vmem:[#allocation11 + $0xd8] sm:$0xff] }
 0x2b0   :  { %v686_v48 = vsel %vm340_vm3, %v658_v46, %v685_v47  ;;  %v1932_v46 = vpack.c.bf16 %v953_v41, %v951_v56  ;;  %v1934_v47 = vpack.c.bf16 %v958_v45, %v956_v44  ;;  %v1064_v56 = vld [vmem:[#allocation13 + $0x58] sm:$0xff] }
 0x2b1   :  { %1608 = vmatmul.mubr.f32.vlgmr.msra.gmra.mrb[2].mxu1 %v686_v48  ;;  %v955_v48 = vld [vmem:[#allocation11 + $0xc0] sm:$0xff]  ;;  %v1964_v41 = vpack.c.bf16 %v1064_v56, %v1063_v40 }
 0x2b2   :  { %1888 = vmatpush3.bf16.msra.mxu1 %v2571_v23  ;;  %1677 = vmatprep.mubr.msk.f32.mxu1 %vm2282_vm0, %v2283_v1 }
 0x2b3   :  { %1889 = vmatprep.subr.bf16.mxu1 %v2281_v0 }
 0x2b6   :  { %1891 = vmatpush3.bf16.msra.mxu1 %v2574_v26 }
 0x2b7   :  { %1892 = vmatprep.subr.bf16.mxu1 %v2281_v0 }
 0x2ba   :  { %1894 = vmatpush3.bf16.msra.mxu1 %v2578_v29 }
 0x2bb   :  { %1895 = vmatprep.subr.bf16.mxu1 %v2281_v0 }
 0x2be   :  { %1897 = vmatpush3.bf16.msra.mxu1 %v2582_v33 }
 0x2bf   :  { %1898 = vmatprep.subr.bf16.mxu1 %v2281_v0 }
 0x2c2   :  { %1900 = vmatpush3.bf16.msra.mxu1 %v2586_v36 }
 0x2c3   :  { %1901 = vmatprep.subr.bf16.mxu1 %v2281_v0 }
 0x2c6   :  { %1903 = vmatpush3.bf16.msra.mxu1 %v2590_v39 }
 0x2c7   :  { %1904 = vmatprep.subr.bf16.mxu1 %v2281_v0 }
 0x2ca   :  { %1906 = vmatpush3.bf16.msra.mxu1 %v2594_v42 }
 0x2cb   :  { %1907 = vmatprep.subr.bf16.mxu1 %v2281_v0 }
 0x2ce   :  { %1909 = vmatpush3.bf16.msra.mxu1 %v2622_v55 }
 0x2cf   :  { %1943 = vmatprep.subr.bf16.mxu1 %v1942_v3  ;;  %v1067_v3 = vld [vmem:[#allocation13 + $0x70] sm:$0xff] }
 0x384   :  { %v754_v59 = vpop.f32.mrb[2].mxu1 }
 0x385   :  { %v755_v60 = vadd.f32 %v1338_v58, %v754_v59  ;;  %v1609_v61 = vpop.f32.mrb[3].mxu1  ;;  %v962_v58 = vld [vmem:[#allocation11 + $0xf8] sm:$0xff]  ;;  %v1936_v59 = vpack.c.bf16 %v957_v49, %v955_v48  ;;  %v1340_v49 = vld [vmem:[%s2717_s8 + $0x4] ss:$0 sm:$0xff] }
 0x386   :  { %v959_v61 = vld [vmem:[#allocation11 + $0xe0] sm:$0xff] }
 0x387   :  { %v758_v62 = vadd.f32 %v755_v60, %v2519_v54  ;;  %v1918_v54 = vpack.c.bf16 %v942_v57, %v940_v9  ;;  %v1938_v60 = vpack.c.bf16 %v962_v58, %v960_v50  ;;  %v1056_v9 = vld [vmem:[#allocation13 + $0x18] sm:$0xff]  ;;  %v1073_v57 = vld [vmem:[#allocation13 + $0xa0] sm:$0xff] }
 0x389   :  { %1643 = vmatmul.mubr.f32.vlgmr.msra.gmra.mrb[12].mxu0 %v758_v62 }
 0x38a   :  { %1040 = vmatprep.mubr.f32.mxu0 %v2283_v1  ;;  %1913 = vmatpush1.bf16.msra.mxu0 %v1912_v6  ;;  %v1072_v6 = vld [vmem:[#allocation13 + $0x98] sm:$0xff] }
 0x38b   :  { %1915 = vmatprep.subr.bf16.mxu0 %v1914_v7  ;;  %v1944_v7 = vpack.c.bf16 %v1054_v4, %v1053_v52  ;;  %v1946_v53 = vpack.c.bf16 %v1072_v6, %v1071_v5  ;;  %v1970_v52 = vpack.c.bf16 %v1084_v51, %v1083_v2  ;;  %v1068_v4 = vld [vmem:[#allocation13 + $0x78] sm:$0xff]  ;;  %v1341_v6 = vld [vmem:[%s2718_s9 + $0x1] ss:$2 sm:$0x3] }
 0x38c   :  { %v1972_v5 = vpack.c.bf16 %v1068_v4, %v1067_v3 }
 0x38e   :  { %1917 = vmatpush1.bf16.msra.mxu0 %v1916_v11  ;;  %v1074_v11 = vld [vmem:[#allocation13 + $0xa8] sm:$0xff] }
 0x38f   :  { %1919 = vmatprep.subr.bf16.mxu0 %v1918_v54  ;;  %v1948_v54 = vpack.c.bf16 %v1056_v9, %v1055_v8  ;;  %v1950_v12 = vpack.c.bf16 %v1074_v11, %v1073_v57 }
 0x392   :  { %1921 = vmatpush1.bf16.msra.mxu0 %v1920_v15  ;;  %v1058_v15 = vld [vmem:[#allocation13 + $0x28] sm:$0xff] }
 0x393   :  { %1923 = vmatprep.subr.bf16.mxu0 %v1922_v24  ;;  %v1060_v24 = vld [vmem:[#allocation13 + $0x38] sm:$0xff] }
 0x396   :  { %1925 = vmatpush1.bf16.msra.mxu0 %v1924_v28  ;;  %v1956_v28 = vpack.c.bf16 %v1060_v24, %v1059_v22 }
 0x397   :  { %1927 = vmatprep.subr.bf16.mxu0 %v1926_v31  ;;  %v1062_v31 = vld [vmem:[#allocation13 + $0x48] sm:$0xff] }
 0x398   :  { %v1960_v37 = vpack.c.bf16 %v1062_v31, %v1061_v25 }
 0x39a   :  { %1929 = vmatpush1.bf16.msra.mxu0 %v1928_v38  ;;  %v1962_v38 = vpack.c.bf16 %v1080_v35, %v1079_v34 }
 0x39b   :  { %1931 = vmatprep.subr.bf16.mxu0 %v1930_v43 }
 0x39e   :  { %1933 = vmatpush1.bf16.msra.mxu0 %v1932_v46 }
 0x39f   :  { %1935 = vmatprep.subr.bf16.mxu0 %v1934_v47  ;;  %v1339_v47 = vld [vmem:[%s2717_s8 + $0x3] ss:$0 sm:$0xff] }
 0x3a2   :  { %1937 = vmatpush1.bf16.msra.mxu0 %v1936_v59  ;;  %v1082_v59 = vld [vmem:[#allocation13 + $0xe8] sm:$0xff] }
 0x3a3   :  { %1939 = vmatprep.subr.bf16.mxu0 %v1938_v60 }
 0x45c   :  { %v841_v16 = vpop.f32.mrb[12].mxu0 }
 0x45d   :  { %v2631_v17 = vsub.f32 %v758_v62, %v841_v16  ;;  %v1644_v19 = vpop.f32.mrb[13].mxu0  ;;  %v961_v62 = vld [vmem:[#allocation11 + $0xf0] sm:$0xff] }
 0x45e   :  { %v1940_v63 = vpack.c.bf16 %v961_v62, %v959_v61  ;;  %v1075_v16 = vld [vmem:[#allocation13 + $0xb0] sm:$0xff]  ;;  %v1076_v19 = vld [vmem:[#allocation13 + $0xb8] sm:$0xff]  ;;  %v1065_v61 = vld [vmem:[#allocation13 + $0x60] sm:$0xff] }
 0x45f   :  { %v846_v20 = vmul.f32 %v2631_v17, %v2631_v17  ;;  %v1954_v21 = vpack.c.bf16 %v1076_v19, %v1075_v16  ;;  %v1066_v62 = vld [vmem:[#allocation13 + $0x68] sm:$0xff]  ;;  %v1343_v19 = vld [vmem:[%s2717_s8 + $0x5] ss:$0 sm:$0xff] }
 0x460   :  { %1941 = vmatpush1.bf16.msra.mxu0 %v1940_v63  ;;  %v1968_v63 = vpack.c.bf16 %v1066_v62, %v1065_v61 }
 0x461   :  { %1678 = vmatmul.mubr.f32.vlgmr.msra.gmra.mrb[4].mxu1 %v846_v20  ;;  %1974 = vmatprep.subr.bf16.mxu0 %v2281_v0  ;;  %v1952_v20 = vpack.c.bf16 %v1058_v15, %v1057_v14 }
 0x462   :  { %1945 = vmatpush3.bf16.msra.mxu1 %v1944_v7  ;;  %v969_v7 = vrot.slane %v1341_v6, %v2545_v18 }
 0x463   :  { %1947 = vmatprep.subr.bf16.mxu1 %v1946_v53  ;;  %v973_v53 = vrot.slane %v1341_v6, %v218_v13 }
 0x466   :  { %1949 = vmatpush3.bf16.msra.mxu1 %v1948_v54 }
 0x467   :  { %1951 = vmatprep.subr.bf16.mxu1 %v1950_v12 }
 0x46a   :  { %1953 = vmatpush3.bf16.msra.mxu1 %v1952_v20 }
 0x46b   :  { %1955 = vmatprep.subr.bf16.mxu1 %v1954_v21  ;;  %v1344_v21 = vld [vmem:[%s2717_s8 + $0x6] ss:$0 sm:$0xff] }
 0x46e   :  { %1957 = vmatpush3.bf16.msra.mxu1 %v1956_v28 }
 0x46f   :  { %1959 = vmatprep.subr.bf16.mxu1 %v1958_v30 }
 0x472   :  { %1961 = vmatpush3.bf16.msra.mxu1 %v1960_v37 }
 0x473   :  { %1963 = vmatprep.subr.bf16.mxu1 %v1962_v38 }
 0x476   :  { %1965 = vmatpush3.bf16.msra.mxu1 %v1964_v41 }
 0x534   :  { %v913_v43 = vpop.f32.mrb[4].mxu1 }
 0x535   :  { %v914_v44 = vadd.f32 1e-05, %v913_v43  ;;  %v1679_v45 = vpop.f32.mrb[5].mxu1 }
 0x537   :  { %2055 = vrsqrt.f32 %v914_v44 }
 0x541   :  { %v2056_v46 = vpop.eup %2055 }
 0x542   :  { %v918_v48 = vmul.f32 %v2056_v46, %v2631_v17  ;;  %v1081_v17 = vld [vmem:[#allocation13 + $0xe0] sm:$0xff] }
 0x543   :  { %v1966_v60 = vpack.c.bf16 %v1082_v59, %v1081_v17 }
 0x544   :  { %v924_v50 = vmul.f32 %v1339_v47, %v918_v48 }
 0x545   :  { %1967 = vmatprep.subr.bf16.mxu1 %v1966_v60 }
 0x546   :  { %v2643_v58 = vadd.f32 %v1340_v49, %v924_v50  ;;  %1969 = vmatpush3.bf16.msra.mxu1 %v1968_v63 }
 0x547   :  { %1971 = vmatprep.subr.bf16.mxu1 %v1970_v52 }
 0x548   :  { %1041 = vmatmul.mubr.f32.vlgmr.msra.gmra.mrb[14].mxu0 %v2643_v58 }
 0x549   :  { %1976 = vmatpush3.bf16.msra.mxu0 %v2571_v23  ;;  %1712 = vmatprep.mubr.msk.f32.mxu0 %vm2282_vm0, %v2283_v1 }
 0x54a   :  { %1977 = vmatprep.subr.bf16.mxu0 %v2281_v0  ;;  %1973 = vmatpush3.bf16.msra.mxu1 %v1972_v5 }
 0x54b   :  { %1998 = vmatprep.subr.bf16.mxu1 %v2281_v0 }
 0x54d   :  { %1979 = vmatpush3.bf16.msra.mxu0 %v2574_v26 }
 0x54e   :  { %1980 = vmatprep.subr.bf16.mxu0 %v2281_v0 }
 0x551   :  { %1982 = vmatpush3.bf16.msra.mxu0 %v2578_v29 }
 0x552   :  { %1983 = vmatprep.subr.bf16.mxu0 %v2281_v0 }
 0x555   :  { %1985 = vmatpush3.bf16.msra.mxu0 %v2582_v33 }
 0x556   :  { %1986 = vmatprep.subr.bf16.mxu0 %v2281_v0 }
 0x559   :  { %1988 = vmatpush3.bf16.msra.mxu0 %v2586_v36 }
 0x55a   :  { %1989 = vmatprep.subr.bf16.mxu0 %v2281_v0 }
 0x55d   :  { %1991 = vmatpush3.bf16.msra.mxu0 %v2590_v39 }
 0x55e   :  { %1992 = vmatprep.subr.bf16.mxu0 %v2281_v0 }
 0x561   :  { %1994 = vmatpush3.bf16.msra.mxu0 %v2594_v42 }
 0x562   :  { %1995 = vmatprep.subr.bf16.mxu0 %v2281_v0 }
 0x565   :  { %1997 = vmatpush3.bf16.msra.mxu0 %v2622_v55 }
 0x61b   :  { %v1042_v8 = vpop.f32.mrb[14].mxu0 }
 0x61c   :  { %v1043_v9 = vadd.f32 %v1042_v8, %v969_v7  ;;  %v1044_v57 = vpop.f32.mrb[15].mxu0 }
 0x61d   :  { %v1045_v11 = vadd.f32 %v1044_v57, %v973_v53 }
 0x61e   :  { %v1049_v54 = vmul.f32 0.01, %v1043_v9  ;;  %vm1047_vm4 = vcmp.gt.f32.partialorder %v1043_v9, 0.0 }
 0x61f   :  { %v1050_v12 = vmul.f32 0.01, %v1045_v11  ;;  %vm1048_vm5 = vcmp.gt.f32.partialorder %v1045_v11, 0.0 }
 0x620   :  { %v1051_v15 = vsel %vm1047_vm4, %v1043_v9, %v1049_v54 }
 0x621   :  { %v1052_v14 = vsel %vm1048_vm5, %v1045_v11, %v1050_v12 }
 0x622   :  { %1154 = vmatprep.mubr.f32.mxu1 %v1052_v14 }
 0x623   :  { %1155 = vmatmul.mubr.f32.vlgmr.msra.gmra.mrb[6].mxu1 %v1051_v15 }
 0x624   :  { %2000 = vmatpush3.bf16.msra.mxu1 %v2571_v23  ;;  %1747 = vmatprep.mubr.msk.f32.mxu1 %vm2282_vm0, %v2283_v1 }
 0x625   :  { %2001 = vmatprep.subr.bf16.mxu1 %v2281_v0 }
 0x628   :  { %2003 = vmatpush3.bf16.msra.mxu1 %v2574_v26 }
 0x629   :  { %2004 = vmatprep.subr.bf16.mxu1 %v2281_v0 }
 0x62c   :  { %2006 = vmatpush3.bf16.msra.mxu1 %v2578_v29 }
 0x62d   :  { %2007 = vmatprep.subr.bf16.mxu1 %v2281_v0 }
 0x630   :  { %2009 = vmatpush3.bf16.msra.mxu1 %v2582_v33 }
 0x631   :  { %2010 = vmatprep.subr.bf16.mxu1 %v2281_v0 }
 0x634   :  { %2012 = vmatpush3.bf16.msra.mxu1 %v2586_v36 }
 0x635   :  { %2013 = vmatprep.subr.bf16.mxu1 %v2281_v0 }
 0x638   :  { %2015 = vmatpush3.bf16.msra.mxu1 %v2590_v39 }
 0x639   :  { %2016 = vmatprep.subr.bf16.mxu1 %v2281_v0 }
 0x63c   :  { %2018 = vmatpush3.bf16.msra.mxu1 %v2594_v42 }
 0x63d   :  { %2019 = vmatprep.subr.bf16.mxu1 %v2281_v0 }
 0x640   :  { %2021 = vmatpush3.bf16.msra.mxu1 %v2622_v55 }
 0x6f6   :  { %v1465_v1 = vpop.f32.mrb[6].mxu1 }
 0x6f7   :  { %v1466_v13 = vpop.f32.mrb[7].mxu1 }
 0x6f8   :  { %v1467_v18 = vadd.f32 %v1466_v13, %v1465_v1 }
 0x6fa   :  { %v1157_v23 = vadd.f32 %v1467_v18, %v1342_v10 }
 0x6fc   :  { %v1160_v26 = vadd.f32 %v1157_v23, %v2643_v58 }
 0x6fe   :  { %1713 = vmatmul.mubr.f32.vlgmr.msra.gmra.mrb[16].mxu0 %v1160_v26 }
 0x7d1   :  { %v1227_v29 = vpop.f32.mrb[16].mxu0 }
 0x7d2   :  { %v1231_v33 = vsub.f32 %v1160_v26, %v1227_v29  ;;  %v1714_v36 = vpop.f32.mrb[17].mxu0 }
 0x7d4   :  { %v1232_v39 = vmul.f32 %v1231_v33, %v1231_v33 }
 0x7d6   :  { %1748 = vmatmul.mubr.f32.vlgmr.msra.gmra.mrb[8].mxu1 %v1232_v39 }
 0x8a9   :  { %v1299_v42 = vpop.f32.mrb[8].mxu1 }
 0x8aa   :  { %v1300_v0 = vadd.f32 1e-05, %v1299_v42  ;;  %v1749_v16 = vpop.f32.mrb[9].mxu1 }
 0x8ac   :  { %2057 = vrsqrt.f32 %v1300_v0 }
 0x8b6   :  { %v2058_v55 = vpop.eup %2057 }
 0x8b7   :  { %v1304_v20 = vmul.f32 %v2058_v55, %v1231_v33 }
 0x8b9   :  { %v1310_v22 = vmul.f32 %v1343_v19, %v1304_v20 }
 0x8bb   :  { %v1316_v24 = vadd.f32 %v1344_v21, %v1310_v22 }
 0x8bd   :  { %1317 = vst [vmem:[#allocation16] sm:$0xf] %v1316_v24 }
 0x8be   :  { %2246 = shalt.err (!%p2243_p12)
}
 0x8bf   :  { %s2247_s5 = scalar_lea.hbm %s2719_s10, 64 }
 0x8c0   :  { %p2248_p13 = scmp.ne.s32.totalorder %s2719_s10, %s2247_s5  ;;  %p2251_p0 = scmp.lt.u32.totalorder %s2247_s5, %s2719_s10 }
 0x8c2   :  { %p2253_p1 = pnand %p2251_p0, %p2248_p13 }
 0x8c4   :  { %2256 = shalt.err (!%p2253_p1)
}
 0x8c5   :  { %1327 = dma.vmem_to_hbm [thread:$0]  %s1325_s19, 64, %s2719_s10, [#allocation4]  }
 0x8c6   :  { %2267 = dma.done.wait [#allocation4], 64  }
 0x8c7   :  { %2268 = vsyncadd [#allocation4], 4294967232 }
 0x8c8   :  { %1331 = vsyncpa [#allocation3], 1 }
 0x8c9   :  { %1332 = vsyncpa [#allocation6], 1 }
 0x8ca   :  { %1333 = vsyncpa [#allocation9], 1 }
 0x8cb   :  { %1334 = vsyncpa [#allocation12], 1 }
 0x8cc   :  { %1335 = vsyncpa [#allocation15], 1 }
 0x8cd   :  { %1336 = vsyncpa [#allocation4], 1 }

</bundles_post_ra>
